<compile_context>
chip_gen: v6e
topology: v6e:2x2x1
jax: 0.10.0
libtpu: 0.0.40
codegen_flags: <defaults>
</compile_context>

<pallas_src>
import functools
import math

import jax
import jax.numpy as jnp
import numpy as np
from jax.experimental import pallas as pl
from jax.experimental.pallas import tpu as pltpu


# -----------------------------------------------------------------------------
# Pallas kernel: the whole encoder stack.  grid = (batch_tiles, num_layers).
# -----------------------------------------------------------------------------
def _encoder_stack_kernel(num_heads, compute_dtype,
                          x_ref, mask_ref,
                          wq_ref, bq_ref, wk_ref, bk_ref, wv_ref, bv_ref,
                          wo_ref, bo_ref, w1_ref, b1_ref, w2_ref, b2_ref,
                          g1_ref, be1_ref, g2_ref, be2_ref,
                          o_ref):
    layer = pl.program_id(1)

    # Layer 0: seed the VMEM-resident activation carry (= the output block) from
    # the embeddings + positional-encoding input block.
    @pl.when(layer == 0)
    def _():
        o_ref[...] = x_ref[...]

    Bt, S, E = o_ref.shape
    H = num_heads
    Dh = E // H
    scale = 1.0 / math.sqrt(Dh)

    x2 = o_ref[...].astype(jnp.float32).reshape(Bt * S, E)      # (Bt*S, E) f32
    x2_c = x2.astype(compute_dtype)                             # MXU operand
    add_mask = mask_ref[...]                                    # (Bt, 1, S) f32

    # ---- multi-head self attention -------------------------------------------
    # Per-head (E, Dh) weight slabs (split outside the kernel) avoid lane slicing
    # of activations; the head dim is folded back through per-head (Dh, E) slabs
    # of the output projection, accumulated in f32 (no jnp.concatenate).
    attn = jnp.zeros((Bt * S, E), jnp.float32)
    for h in range(H):
        q = jnp.dot(x2_c, wq_ref[h], preferred_element_type=jnp.float32) + bq_ref[h]
        k = jnp.dot(x2_c, wk_ref[h], preferred_element_type=jnp.float32) + bk_ref[h]
        v = jnp.dot(x2_c, wv_ref[h], preferred_element_type=jnp.float32) + bv_ref[h]
        q3 = q.reshape(Bt, S, Dh).astype(compute_dtype)
        k3 = k.reshape(Bt, S, Dh).astype(compute_dtype)
        v3 = v.reshape(Bt, S, Dh).astype(compute_dtype)

        s = jnp.einsum("bqd,bkd->bqk", q3, k3,
                       preferred_element_type=jnp.float32) * scale + add_mask
        m = jnp.max(s, axis=-1, keepdims=True)
        e = jnp.exp(s - m)
        p = e * pl.reciprocal(jnp.sum(e, axis=-1, keepdims=True), approx=True)
        ctx = jnp.einsum("bqk,bkd->bqd", p.astype(compute_dtype), v3,
                         preferred_element_type=jnp.float32)     # (Bt, S, Dh)
        attn = attn + jnp.dot(ctx.reshape(Bt * S, Dh).astype(compute_dtype),
                              wo_ref[h], preferred_element_type=jnp.float32)
    attn = attn + bo_ref[...]

    def layer_norm(inp, g, b):
        mu = jnp.mean(inp, axis=-1, keepdims=True)
        var = jnp.mean((inp - mu) ** 2, axis=-1, keepdims=True)
        return (inp - mu) * jax.lax.rsqrt(var + 1e-5) * g + b

    # dropout1 / dropout2 are identity in eval mode.
    x2 = layer_norm(x2 + attn, g1_ref[...], be1_ref[...])

    # ---- position-wise feed-forward -------------------------------------------
    # TODO(synk): for production E/F (e.g. 1024/4096) add a grid axis tiling the FFN
    #             over ff_dim so w1/w2 stay within v7x's 64 MiB VMEM.
    h1 = jnp.dot(x2.astype(compute_dtype), w1_ref[...],
                 preferred_element_type=jnp.float32) + b1_ref[...]
    h1 = jnp.maximum(h1, 0.0)
    ff = jnp.dot(h1.astype(compute_dtype), w2_ref[...],
                 preferred_element_type=jnp.float32) + b2_ref[...]
    x2 = layer_norm(x2 + ff, g2_ref[...], be2_ref[...])

    # NOTE: for toy E=32 the output lane width is <128 (masked stores); the store
    # only happens once per batch tile per layer so it is not the bottleneck here.
    o_ref[...] = x2.reshape(Bt, S, E).astype(o_ref.dtype)


# -----------------------------------------------------------------------------
# Wrapper: parameter stacking / per-head splitting and pallas_call plumbing.
# -----------------------------------------------------------------------------
def _pick_batch_tile(B, S, target_rows=256):
    """Biggest divisor of B such that Bt*S ~ target_rows (fill the MXU M dim)."""
    bt = max(1, min(B, pl.cdiv(target_rows, S)))
    while B % bt:
        bt -= 1
    return bt


def _additive_key_mask(padding_mask, B, S):
    if padding_mask is None:
        return jnp.zeros((B, 1, S), jnp.float32)
    return jnp.where(padding_mask[:, None, :], -1e9, 0.0).astype(jnp.float32)


def encoder_stack(x, block_params, num_heads, padding_mask=None,
                  compute_dtype=jnp.bfloat16):
    """All encoder blocks in a single pallas_call (layer axis inside the grid)."""
    B, S, E = x.shape
    L = len(block_params)
    H = num_heads
    assert E % H == 0
    Dh = E // H

    def stack(name):
        return jnp.stack([p[name] for p in block_params])       # leading layer axis

    # Per-head split (done once, outside the kernel): Q/K/V (E,E)->(H,E,Dh),
    # Wo (E,E)->(H,Dh,E).  Matmul weights are cast to bf16 for the MXU.
    wq = stack("wq").reshape(L, E, H, Dh).transpose(0, 2, 1, 3).astype(compute_dtype)
    wk = stack("wk").reshape(L, E, H, Dh).transpose(0, 2, 1, 3).astype(compute_dtype)
    wv = stack("wv").reshape(L, E, H, Dh).transpose(0, 2, 1, 3).astype(compute_dtype)
    wo = stack("wo").reshape(L, H, Dh, E).astype(compute_dtype)
    bq = stack("bq").reshape(L, H, 1, Dh).astype(jnp.float32)
    bk = stack("bk").reshape(L, H, 1, Dh).astype(jnp.float32)
    bv = stack("bv").reshape(L, H, 1, Dh).astype(jnp.float32)
    bo = stack("bo").astype(jnp.float32)                         # (L, 1, E)
    w1 = stack("w1").astype(compute_dtype)                       # (L, E, F)
    b1 = stack("b1").astype(jnp.float32)                         # (L, 1, F)
    w2 = stack("w2").astype(compute_dtype)                       # (L, F, E)
    b2 = stack("b2").astype(jnp.float32)                         # (L, 1, E)
    g1 = stack("g1").astype(jnp.float32)
    be1 = stack("be1").astype(jnp.float32)
    g2 = stack("g2").astype(jnp.float32)
    be2 = stack("be2").astype(jnp.float32)

    add_mask = _additive_key_mask(padding_mask, B, S)

    Bt = _pick_batch_tile(B, S)
    grid = (B // Bt, L)

    def act_spec():
        return pl.BlockSpec((Bt, S, E), lambda b, l: (b, 0, 0))

    def layer_spec(arr):
        n0 = arr.ndim - 1
        # Squeeze the layer dim (block size 1); stream layer l's weights per step.
        return pl.BlockSpec((None,) + arr.shape[1:],
                            lambda b, l, _n=n0: (l,) + (0,) * _n)

    weight_args = [wq, bq, wk, bk, wv, bv, wo, bo,
                   w1, b1, w2, b2, g1, be1, g2, be2]
    in_specs = [act_spec(),
                pl.BlockSpec((Bt, 1, S), lambda b, l: (b, 0, 0))]
    in_specs += [layer_spec(w) for w in weight_args]

    kernel = functools.partial(_encoder_stack_kernel, num_heads, compute_dtype)
    return pl.pallas_call(
        kernel,
        out_shape=jax.ShapeDtypeStruct((B, S, E), jnp.float32),
        grid=grid,
        in_specs=in_specs,
        out_specs=act_spec(),
        compiler_params=pltpu.CompilerParams(
            dimension_semantics=("parallel", "arbitrary"),
            vmem_limit_bytes=64 * 1024 * 1024,
        ),
    )(x.astype(jnp.float32), add_mask, *weight_args)


# -----------------------------------------------------------------------------
# Plain-JAX glue: embedding lookup + sinusoidal positional encoding.
# -----------------------------------------------------------------------------
def positional_encoding(seq_len, d_model):
    pos = np.arange(seq_len, dtype=np.float32)[:, None]
    div = np.exp(np.arange(0, d_model, 2, dtype=np.float32)
                 * (-math.log(10000.0) / d_model))
    pe = np.zeros((seq_len, d_model), dtype=np.float32)
    pe[:, 0::2] = np.sin(pos * div)
    pe[:, 1::2] = np.cos(pos * div)[:, : d_model // 2]           # odd d_model safe
    return jnp.asarray(pe)


def transformer_encoder_forward(input_ids, embedding_table, block_params,
                                num_heads, padding_mask=None,
                                compute_dtype=jnp.bfloat16):
    B, S = input_ids.shape
    E = embedding_table.shape[1]
    x = embedding_table[input_ids] * math.sqrt(E)                # (B, S, E)
    x = x + positional_encoding(S, E)[None]
    # top-level dropout: identity in eval mode
    return encoder_stack(x, block_params, num_heads, padding_mask, compute_dtype)


# -----------------------------------------------------------------------------
# Pure-JAX reference (same math, no Pallas).  mm_dtype=float32 is faithful to the
# PyTorch module; mm_dtype=bfloat16 mirrors the kernel's MXU casting.
# -----------------------------------------------------------------------------
def _block_ref(x, p, num_heads, add_mask, mm_dtype):
    B, S, E = x.shape
    H = num_heads
    Dh = E // H
    scale = 1.0 / math.sqrt(Dh)

    def mm(a, b):
        return jnp.dot(a.astype(mm_dtype), b.astype(mm_dtype),
                       preferred_element_type=jnp.float32)

    x2 = x.reshape(B * S, E).astype(jnp.float32)
    attn = jnp.zeros((B * S, E), jnp.float32)
    for h in range(H):
        sl = slice(h * Dh, (h + 1) * Dh)
        q = (mm(x2, p["wq"][:, sl]) + p["bq"][:, sl]).reshape(B, S, Dh)
        k = (mm(x2, p["wk"][:, sl]) + p["bk"][:, sl]).reshape(B, S, Dh)
        v = (mm(x2, p["wv"][:, sl]) + p["bv"][:, sl]).reshape(B, S, Dh)
        s = jnp.einsum("bqd,bkd->bqk", q.astype(mm_dtype), k.astype(mm_dtype),
                       preferred_element_type=jnp.float32) * scale + add_mask
        pa = jax.nn.softmax(s, axis=-1)
        ctx = jnp.einsum("bqk,bkd->bqd", pa.astype(mm_dtype), v.astype(mm_dtype),
                         preferred_element_type=jnp.float32)
        attn = attn + mm(ctx.reshape(B * S, Dh), p["wo"][sl, :])
    attn = attn + p["bo"]

    def ln(inp, g, b):
        mu = jnp.mean(inp, axis=-1, keepdims=True)
        var = jnp.mean((inp - mu) ** 2, axis=-1, keepdims=True)
        return (inp - mu) * jax.lax.rsqrt(var + 1e-5) * g + b

    x2 = ln(x2 + attn, p["g1"], p["be1"])
    h1 = jnp.maximum(mm(x2, p["w1"]) + p["b1"], 0.0)
    ff = mm(h1, p["w2"]) + p["b2"]
    x2 = ln(x2 + ff, p["g2"], p["be2"])
    return x2.reshape(B, S, E)


def _encoder_ref(input_ids, embedding_table, block_params, num_heads,
                 padding_mask=None, mm_dtype=jnp.float32):
    B, S = input_ids.shape
    E = embedding_table.shape[1]
    x = embedding_table[input_ids] * math.sqrt(E)
    x = x + positional_encoding(S, E)[None]
    add_mask = _additive_key_mask(padding_mask, B, S)
    for p in block_params:
        x = _block_ref(x, p, num_heads, add_mask, mm_dtype)
    return x


# -----------------------------------------------------------------------------
# Deterministic parameter construction (synthetic, xavier-ish scale).
# -----------------------------------------------------------------------------
def make_block_params(key, embed_dim, ff_dim):
    ks = jax.random.split(key, 16)

    def w(k, shape):
        fan_in, fan_out = shape
        std = math.sqrt(2.0 / (fan_in + fan_out))
        return jax.random.normal(k, shape, jnp.float32) * std

    def b(k, n):
        return jax.random.normal(k, (1, n), jnp.float32) * 0.05

    return {
        "wq": w(ks[0], (embed_dim, embed_dim)), "bq": b(ks[1], embed_dim),
        "wk": w(ks[2], (embed_dim, embed_dim)), "bk": b(ks[3], embed_dim),
        "wv": w(ks[4], (embed_dim, embed_dim)), "bv": b(ks[5], embed_dim),
        "wo": w(ks[6], (embed_dim, embed_dim)), "bo": b(ks[7], embed_dim),
        "w1": w(ks[8], (embed_dim, ff_dim)),    "b1": b(ks[9], ff_dim),
        "w2": w(ks[10], (ff_dim, embed_dim)),   "b2": b(ks[11], embed_dim),
        "g1": 1.0 + 0.05 * jax.random.normal(ks[12], (1, embed_dim), jnp.float32),
        "be1": 0.05 * jax.random.normal(ks[13], (1, embed_dim), jnp.float32),
        "g2": 1.0 + 0.05 * jax.random.normal(ks[14], (1, embed_dim), jnp.float32),
        "be2": 0.05 * jax.random.normal(ks[15], (1, embed_dim), jnp.float32),
    }


if __name__ == "__main__":
    # Small shapes: batch=2, seq=8, embed=32, heads=4, ff=64, layers=2, vocab=50
    B, S, E, H, F, L, V = 2, 8, 32, 4, 64, 2, 50

    root = jax.random.PRNGKey(0)
    k_emb, k_ids, k_blocks = jax.random.split(root, 3)

    embedding_table = jax.random.normal(k_emb, (V, E), jnp.float32) * 0.1
    input_ids = jax.random.randint(k_ids, (B, S), 0, V)
    # Key padding mask: last two tokens of batch element 1 are pads.
    padding_mask = jnp.zeros((B, S), jnp.bool_).at[1, S - 2:].set(True)

    block_params = [make_block_params(k, E, F)
                    for k in jax.random.split(k_blocks, L)]

    out = transformer_encoder_forward(input_ids, embedding_table, block_params, H,
                                      padding_mask=padding_mask)
    out = jax.block_until_ready(out)
    assert out.shape == (B, S, E) and out.dtype == jnp.float32

    # Tight check vs. a reference that mirrors the kernel's bf16 MXU casting.
    ref_mirror = _encoder_ref(input_ids, embedding_table, block_params, H,
                              padding_mask=padding_mask, mm_dtype=jnp.bfloat16)
    np.testing.assert_allclose(np.asarray(out), np.asarray(ref_mirror),
                               rtol=1e-2, atol=1e-2)

    # Looser semantic check vs. the full-f32 (PyTorch-faithful) reference.
    ref_f32 = _encoder_ref(input_ids, embedding_table, block_params, H,
                           padding_mask=padding_mask, mm_dtype=jnp.float32)
    np.testing.assert_allclose(np.asarray(out), np.asarray(ref_f32),
                               rtol=8e-2, atol=8e-2)

    # Also exercise the padding_mask=None (PyTorch default) path.
    out_nomask = jax.block_until_ready(
        transformer_encoder_forward(input_ids, embedding_table, block_params, H))
    ref_nomask = _encoder_ref(input_ids, embedding_table, block_params, H,
                              mm_dtype=jnp.bfloat16)
    np.testing.assert_allclose(np.asarray(out_nomask), np.asarray(ref_nomask),
                               rtol=1e-2, atol=1e-2)

    print("KERNEL_OK")
</pallas_src>

<mosaic_0001>
module attributes {stable_mosaic.version = 11 : i64} {
  func.func @_encoder_stack_kernel(%arg0: i32, %arg1: i32, %arg2: memref<2x8x32xf32, #tpu.memory_space<vmem>>, %arg3: memref<2x1x8xf32, #tpu.memory_space<vmem>>, %arg4: memref<1x4x32x8xbf16, #tpu.memory_space<vmem>>, %arg5: memref<1x4x1x8xf32, #tpu.memory_space<vmem>>, %arg6: memref<1x4x32x8xbf16, #tpu.memory_space<vmem>>, %arg7: memref<1x4x1x8xf32, #tpu.memory_space<vmem>>, %arg8: memref<1x4x32x8xbf16, #tpu.memory_space<vmem>>, %arg9: memref<1x4x1x8xf32, #tpu.memory_space<vmem>>, %arg10: memref<1x4x8x32xbf16, #tpu.memory_space<vmem>>, %arg11: memref<1x1x32xf32, #tpu.memory_space<vmem>>, %arg12: memref<1x32x64xbf16, #tpu.memory_space<vmem>>, %arg13: memref<1x1x64xf32, #tpu.memory_space<vmem>>, %arg14: memref<1x64x32xbf16, #tpu.memory_space<vmem>>, %arg15: memref<1x1x32xf32, #tpu.memory_space<vmem>>, %arg16: memref<1x1x32xf32, #tpu.memory_space<vmem>>, %arg17: memref<1x1x32xf32, #tpu.memory_space<vmem>>, %arg18: memref<1x1x32xf32, #tpu.memory_space<vmem>>, %arg19: memref<1x1x32xf32, #tpu.memory_space<vmem>>, %arg20: memref<2x8x32xf32, #tpu.memory_space<vmem>>) attributes {dimension_semantics = [#tpu.dimension_semantics<parallel>, #tpu.dimension_semantics<arbitrary>], iteration_bounds = array<i64: 1, 2>, scalar_prefetch = 0 : i64, scratch_operands = 0 : i64, tpu.core_type = #tpu.core_type<tc>, window_params = [{transform_indices = @transform_0, window_bounds = array<i64: 2, 8, 32>}, {transform_indices = @transform_1, window_bounds = array<i64: 2, 1, 8>}, {transform_indices = @transform_2, window_bounds = array<i64: 1, 4, 32, 8>}, {transform_indices = @transform_3, window_bounds = array<i64: 1, 4, 1, 8>}, {transform_indices = @transform_4, window_bounds = array<i64: 1, 4, 32, 8>}, {transform_indices = @transform_5, window_bounds = array<i64: 1, 4, 1, 8>}, {transform_indices = @transform_6, window_bounds = array<i64: 1, 4, 32, 8>}, {transform_indices = @transform_7, window_bounds = array<i64: 1, 4, 1, 8>}, {transform_indices = @transform_8, window_bounds = array<i64: 1, 4, 8, 32>}, {transform_indices = @transform_9, window_bounds = array<i64: 1, 1, 32>}, {transform_indices = @transform_10, window_bounds = array<i64: 1, 32, 64>}, {transform_indices = @transform_11, window_bounds = array<i64: 1, 1, 64>}, {transform_indices = @transform_12, window_bounds = array<i64: 1, 64, 32>}, {transform_indices = @transform_13, window_bounds = array<i64: 1, 1, 32>}, {transform_indices = @transform_14, window_bounds = array<i64: 1, 1, 32>}, {transform_indices = @transform_15, window_bounds = array<i64: 1, 1, 32>}, {transform_indices = @transform_16, window_bounds = array<i64: 1, 1, 32>}, {transform_indices = @transform_17, window_bounds = array<i64: 1, 1, 32>}, {transform_indices = @transform_18, window_bounds = array<i64: 2, 8, 32>}]} {
    %c0_i32 = arith.constant 0 : i32
    %0 = arith.cmpi eq, %arg1, %c0_i32 : i32
    %1 = arith.extui %0 : i1 to i32
    %c0_i32_0 = arith.constant 0 : i32
    %2 = arith.cmpi ne, %1, %c0_i32_0 : i32
    scf.if %2 {
      %c0_194 = arith.constant 0 : index
      %c0_195 = arith.constant 0 : index
      %c0_196 = arith.constant 0 : index
      %286 = vector.load %arg2[%c0_194, %c0_195, %c0_196] : memref<2x8x32xf32, #tpu.memory_space<vmem>>, vector<2x8x32xf32>
      %c0_197 = arith.constant 0 : index
      %c0_198 = arith.constant 0 : index
      %c0_199 = arith.constant 0 : index
      %287 = vector.load %arg20[%c0_197, %c0_198, %c0_199] : memref<2x8x32xf32, #tpu.memory_space<vmem>>, vector<2x8x32xf32>
      tpu.vector_store %arg20[%c0_197, %c0_198, %c0_199], %286 {strides = array<i32>} : memref<2x8x32xf32, #tpu.memory_space<vmem>>, vector<2x8x32xf32>,
    } else {
    }
    %c0 = arith.constant 0 : index
    %c0_1 = arith.constant 0 : index
    %c0_2 = arith.constant 0 : index
    %3 = vector.load %arg20[%c0, %c0_1, %c0_2] : memref<2x8x32xf32, #tpu.memory_space<vmem>>, vector<2x8x32xf32>
    %4 = vector.shape_cast %3 : vector<2x8x32xf32> to vector<16x32xf32>
    %5 = arith.truncf %4 : vector<16x32xf32> to vector<16x32xbf16>
    %c0_3 = arith.constant 0 : index
    %c0_4 = arith.constant 0 : index
    %c0_5 = arith.constant 0 : index
    %6 = vector.load %arg3[%c0_3, %c0_4, %c0_5] : memref<2x1x8xf32, #tpu.memory_space<vmem>>, vector<2x1x8xf32>
    %cst = arith.constant 0.000000e+00 : f32
    %7 = vector.broadcast %cst : f32 to vector<16x32xf32>
    %c0_6 = arith.constant 0 : index
    %c0_7 = arith.constant 0 : index
    %c0_8 = arith.constant 0 : index
    %c0_9 = arith.constant 0 : index
    %8 = vector.load %arg4[%c0_6, %c0_7, %c0_8, %c0_9] : memref<1x4x32x8xbf16, #tpu.memory_space<vmem>>, vector<1x1x32x8xbf16>
    %9 = vector.shape_cast %8 : vector<1x1x32x8xbf16> to vector<32x8xbf16>
    %cst_10 = arith.constant dense<0.000000e+00> : vector<16x8xf32>
    %10 = tpu.matmul %5, %9, %cst_10 {dimension_numbers = #tpu.dot_dimension_numbers<[1], [0], [0], [1], [0, 0, 1, 1], [], []>} : vector<16x32xbf16>, vector<32x8xbf16>, vector<16x8xf32> -> vector<16x8xf32>
    %c0_11 = arith.constant 0 : index
    %c0_12 = arith.constant 0 : index
    %c0_13 = arith.constant 0 : index
    %c0_14 = arith.constant 0 : index
    %11 = vector.load %arg5[%c0_11, %c0_12, %c0_13, %c0_14] : memref<1x4x1x8xf32, #tpu.memory_space<vmem>>, vector<1x1x1x8xf32>
    %12 = vector.shape_cast %11 : vector<1x1x1x8xf32> to vector<1x8xf32>
    %13 = vector.broadcast %12 : vector<1x8xf32> to vector<16x8xf32>
    %14 = arith.addf %10, %13 : vector<16x8xf32>
    %c0_15 = arith.constant 0 : index
    %c0_16 = arith.constant 0 : index
    %c0_17 = arith.constant 0 : index
    %c0_18 = arith.constant 0 : index
    %15 = vector.load %arg6[%c0_15, %c0_16, %c0_17, %c0_18] : memref<1x4x32x8xbf16, #tpu.memory_space<vmem>>, vector<1x1x32x8xbf16>
    %16 = vector.shape_cast %15 : vector<1x1x32x8xbf16> to vector<32x8xbf16>
    %cst_19 = arith.constant dense<0.000000e+00> : vector<16x8xf32>
    %17 = tpu.matmul %5, %16, %cst_19 {dimension_numbers = #tpu.dot_dimension_numbers<[1], [0], [0], [1], [0, 0, 1, 1], [], []>} : vector<16x32xbf16>, vector<32x8xbf16>, vector<16x8xf32> -> vector<16x8xf32>
    %c0_20 = arith.constant 0 : index
    %c0_21 = arith.constant 0 : index
    %c0_22 = arith.constant 0 : index
    %c0_23 = arith.constant 0 : index
    %18 = vector.load %arg7[%c0_20, %c0_21, %c0_22, %c0_23] : memref<1x4x1x8xf32, #tpu.memory_space<vmem>>, vector<1x1x1x8xf32>
    %19 = vector.shape_cast %18 : vector<1x1x1x8xf32> to vector<1x8xf32>
    %20 = vector.broadcast %19 : vector<1x8xf32> to vector<16x8xf32>
    %21 = arith.addf %17, %20 : vector<16x8xf32>
    %c0_24 = arith.constant 0 : index
    %c0_25 = arith.constant 0 : index
    %c0_26 = arith.constant 0 : index
    %c0_27 = arith.constant 0 : index
    %22 = vector.load %arg8[%c0_24, %c0_25, %c0_26, %c0_27] : memref<1x4x32x8xbf16, #tpu.memory_space<vmem>>, vector<1x1x32x8xbf16>
    %23 = vector.shape_cast %22 : vector<1x1x32x8xbf16> to vector<32x8xbf16>
    %cst_28 = arith.constant dense<0.000000e+00> : vector<16x8xf32>
    %24 = tpu.matmul %5, %23, %cst_28 {dimension_numbers = #tpu.dot_dimension_numbers<[1], [0], [0], [1], [0, 0, 1, 1], [], []>} : vector<16x32xbf16>, vector<32x8xbf16>, vector<16x8xf32> -> vector<16x8xf32>
    %c0_29 = arith.constant 0 : index
    %c0_30 = arith.constant 0 : index
    %c0_31 = arith.constant 0 : index
    %c0_32 = arith.constant 0 : index
    %25 = vector.load %arg9[%c0_29, %c0_30, %c0_31, %c0_32] : memref<1x4x1x8xf32, #tpu.memory_space<vmem>>, vector<1x1x1x8xf32>
    %26 = vector.shape_cast %25 : vector<1x1x1x8xf32> to vector<1x8xf32>
    %27 = vector.broadcast %26 : vector<1x8xf32> to vector<16x8xf32>
    %28 = arith.addf %24, %27 : vector<16x8xf32>
    %29 = vector.shape_cast %14 : vector<16x8xf32> to vector<2x8x8xf32>
    %30 = arith.truncf %29 : vector<2x8x8xf32> to vector<2x8x8xbf16>
    %31 = vector.shape_cast %21 : vector<16x8xf32> to vector<2x8x8xf32>
    %32 = arith.truncf %31 : vector<2x8x8xf32> to vector<2x8x8xbf16>
    %33 = vector.shape_cast %28 : vector<16x8xf32> to vector<2x8x8xf32>
    %34 = arith.truncf %33 : vector<2x8x8xf32> to vector<2x8x8xbf16>
    "tpu.trace_start"() <{level = 10 : i32, message = "bqd,bkd->bqk"}> : () -> ()
    %cst_33 = arith.constant dense<0.000000e+00> : vector<2x8x8xf32>
    %35 = tpu.matmul %30, %32, %cst_33 {dimension_numbers = #tpu.dot_dimension_numbers<[2], [2], [1], [1], [0, 0, 0, 1, 1, 1], [0], [0]>} : vector<2x8x8xbf16>, vector<2x8x8xbf16>, vector<2x8x8xf32> -> vector<2x8x8xf32>
    "tpu.trace_stop"() : () -> ()
    %cst_34 = arith.constant 0.353553385 : f32
    %36 = vector.broadcast %cst_34 : f32 to vector<2x8x8xf32>
    %37 = arith.mulf %35, %36 : vector<2x8x8xf32>
    %38 = vector.broadcast %6 : vector<2x1x8xf32> to vector<2x8x8xf32>
    %39 = arith.addf %37, %38 : vector<2x8x8xf32>
    %cst_35 = arith.constant dense<0xFF800000> : vector<2x8xf32>
    %40 = vector.multi_reduction <maximumf>, %39, %cst_35 [2] : vector<2x8x8xf32> to vector<2x8xf32>
    %41 = vector.shape_cast %40 : vector<2x8xf32> to vector<2x8x1xf32>
    %42 = vector.broadcast %41 : vector<2x8x1xf32> to vector<2x8x8xf32>
    %43 = arith.subf %39, %42 : vector<2x8x8xf32>
    %44 = math.exp %43 : vector<2x8x8xf32>
    %cst_36 = arith.constant dense<0.000000e+00> : vector<2x8xf32>
    %45 = vector.multi_reduction <add>, %44, %cst_36 [2] : vector<2x8x8xf32> to vector<2x8xf32>
    %46 = vector.shape_cast %45 : vector<2x8xf32> to vector<2x8x1xf32>
    %47 = tpu.reciprocal %46 {approx = true} : vector<2x8x1xf32> -> vector<2x8x1xf32>
    %48 = vector.broadcast %47 : vector<2x8x1xf32> to vector<2x8x8xf32>
    %49 = arith.mulf %44, %48 : vector<2x8x8xf32>
    %50 = arith.truncf %49 : vector<2x8x8xf32> to vector<2x8x8xbf16>
    "tpu.trace_start"() <{level = 10 : i32, message = "bqk,bkd->bqd"}> : () -> ()
    %cst_37 = arith.constant dense<0.000000e+00> : vector<2x8x8xf32>
    %51 = tpu.matmul %50, %34, %cst_37 {dimension_numbers = #tpu.dot_dimension_numbers<[2], [1], [1], [2], [0, 0, 0, 1, 1, 2], [0], [0]>} : vector<2x8x8xbf16>, vector<2x8x8xbf16>, vector<2x8x8xf32> -> vector<2x8x8xf32>
    "tpu.trace_stop"() : () -> ()
    %52 = vector.shape_cast %51 : vector<2x8x8xf32> to vector<16x8xf32>
    %53 = arith.truncf %52 : vector<16x8xf32> to vector<16x8xbf16>
    %c0_38 = arith.constant 0 : index
    %c0_39 = arith.constant 0 : index
    %c0_40 = arith.constant 0 : index
    %c0_41 = arith.constant 0 : index
    %54 = vector.load %arg10[%c0_38, %c0_39, %c0_40, %c0_41] : memref<1x4x8x32xbf16, #tpu.memory_space<vmem>>, vector<1x1x8x32xbf16>
    %55 = vector.shape_cast %54 : vector<1x1x8x32xbf16> to vector<8x32xbf16>
    %cst_42 = arith.constant dense<0.000000e+00> : vector<16x32xf32>
    %56 = tpu.matmul %53, %55, %cst_42 {dimension_numbers = #tpu.dot_dimension_numbers<[1], [0], [0], [1], [0, 0, 1, 1], [], []>} : vector<16x8xbf16>, vector<8x32xbf16>, vector<16x32xf32> -> vector<16x32xf32>
    %57 = arith.addf %7, %56 : vector<16x32xf32>
    %c0_43 = arith.constant 0 : index
    %c1 = arith.constant 1 : index
    %c0_44 = arith.constant 0 : index
    %c0_45 = arith.constant 0 : index
    %58 = vector.load %arg4[%c0_43, %c1, %c0_44, %c0_45] : memref<1x4x32x8xbf16, #tpu.memory_space<vmem>>, vector<1x1x32x8xbf16>
    %59 = vector.shape_cast %58 : vector<1x1x32x8xbf16> to vector<32x8xbf16>
    %cst_46 = arith.constant dense<0.000000e+00> : vector<16x8xf32>
    %60 = tpu.matmul %5, %59, %cst_46 {dimension_numbers = #tpu.dot_dimension_numbers<[1], [0], [0], [1], [0, 0, 1, 1], [], []>} : vector<16x32xbf16>, vector<32x8xbf16>, vector<16x8xf32> -> vector<16x8xf32>
    %c0_47 = arith.constant 0 : index
    %c1_48 = arith.constant 1 : index
    %c0_49 = arith.constant 0 : index
    %c0_50 = arith.constant 0 : index
    %61 = vector.load %arg5[%c0_47, %c1_48, %c0_49, %c0_50] : memref<1x4x1x8xf32, #tpu.memory_space<vmem>>, vector<1x1x1x8xf32>
    %62 = vector.shape_cast %61 : vector<1x1x1x8xf32> to vector<1x8xf32>
    %63 = vector.broadcast %62 : vector<1x8xf32> to vector<16x8xf32>
    %64 = arith.addf %60, %63 : vector<16x8xf32>
    %c0_51 = arith.constant 0 : index
    %c1_52 = arith.constant 1 : index
    %c0_53 = arith.constant 0 : index
    %c0_54 = arith.constant 0 : index
    %65 = vector.load %arg6[%c0_51, %c1_52, %c0_53, %c0_54] : memref<1x4x32x8xbf16, #tpu.memory_space<vmem>>, vector<1x1x32x8xbf16>
    %66 = vector.shape_cast %65 : vector<1x1x32x8xbf16> to vector<32x8xbf16>
    %cst_55 = arith.constant dense<0.000000e+00> : vector<16x8xf32>
    %67 = tpu.matmul %5, %66, %cst_55 {dimension_numbers = #tpu.dot_dimension_numbers<[1], [0], [0], [1], [0, 0, 1, 1], [], []>} : vector<16x32xbf16>, vector<32x8xbf16>, vector<16x8xf32> -> vector<16x8xf32>
    %c0_56 = arith.constant 0 : index
    %c1_57 = arith.constant 1 : index
    %c0_58 = arith.constant 0 : index
    %c0_59 = arith.constant 0 : index
    %68 = vector.load %arg7[%c0_56, %c1_57, %c0_58, %c0_59] : memref<1x4x1x8xf32, #tpu.memory_space<vmem>>, vector<1x1x1x8xf32>
    %69 = vector.shape_cast %68 : vector<1x1x1x8xf32> to vector<1x8xf32>
    %70 = vector.broadcast %69 : vector<1x8xf32> to vector<16x8xf32>
    %71 = arith.addf %67, %70 : vector<16x8xf32>
    %c0_60 = arith.constant 0 : index
    %c1_61 = arith.constant 1 : index
    %c0_62 = arith.constant 0 : index
    %c0_63 = arith.constant 0 : index
    %72 = vector.load %arg8[%c0_60, %c1_61, %c0_62, %c0_63] : memref<1x4x32x8xbf16, #tpu.memory_space<vmem>>, vector<1x1x32x8xbf16>
    %73 = vector.shape_cast %72 : vector<1x1x32x8xbf16> to vector<32x8xbf16>
    %cst_64 = arith.constant dense<0.000000e+00> : vector<16x8xf32>
    %74 = tpu.matmul %5, %73, %cst_64 {dimension_numbers = #tpu.dot_dimension_numbers<[1], [0], [0], [1], [0, 0, 1, 1], [], []>} : vector<16x32xbf16>, vector<32x8xbf16>, vector<16x8xf32> -> vector<16x8xf32>
    %c0_65 = arith.constant 0 : index
    %c1_66 = arith.constant 1 : index
    %c0_67 = arith.constant 0 : index
    %c0_68 = arith.constant 0 : index
    %75 = vector.load %arg9[%c0_65, %c1_66, %c0_67, %c0_68] : memref<1x4x1x8xf32, #tpu.memory_space<vmem>>, vector<1x1x1x8xf32>
    %76 = vector.shape_cast %75 : vector<1x1x1x8xf32> to vector<1x8xf32>
    %77 = vector.broadcast %76 : vector<1x8xf32> to vector<16x8xf32>
    %78 = arith.addf %74, %77 : vector<16x8xf32>
    %79 = vector.shape_cast %64 : vector<16x8xf32> to vector<2x8x8xf32>
    %80 = arith.truncf %79 : vector<2x8x8xf32> to vector<2x8x8xbf16>
    %81 = vector.shape_cast %71 : vector<16x8xf32> to vector<2x8x8xf32>
    %82 = arith.truncf %81 : vector<2x8x8xf32> to vector<2x8x8xbf16>
    %83 = vector.shape_cast %78 : vector<16x8xf32> to vector<2x8x8xf32>
    %84 = arith.truncf %83 : vector<2x8x8xf32> to vector<2x8x8xbf16>
    "tpu.trace_start"() <{level = 10 : i32, message = "bqd,bkd->bqk"}> : () -> ()
    %cst_69 = arith.constant dense<0.000000e+00> : vector<2x8x8xf32>
    %85 = tpu.matmul %80, %82, %cst_69 {dimension_numbers = #tpu.dot_dimension_numbers<[2], [2], [1], [1], [0, 0, 0, 1, 1, 1], [0], [0]>} : vector<2x8x8xbf16>, vector<2x8x8xbf16>, vector<2x8x8xf32> -> vector<2x8x8xf32>
    "tpu.trace_stop"() : () -> ()
    %cst_70 = arith.constant 0.353553385 : f32
    %86 = vector.broadcast %cst_70 : f32 to vector<2x8x8xf32>
    %87 = arith.mulf %85, %86 : vector<2x8x8xf32>
    %88 = vector.broadcast %6 : vector<2x1x8xf32> to vector<2x8x8xf32>
    %89 = arith.addf %87, %88 : vector<2x8x8xf32>
    %cst_71 = arith.constant dense<0xFF800000> : vector<2x8xf32>
    %90 = vector.multi_reduction <maximumf>, %89, %cst_71 [2] : vector<2x8x8xf32> to vector<2x8xf32>
    %91 = vector.shape_cast %90 : vector<2x8xf32> to vector<2x8x1xf32>
    %92 = vector.broadcast %91 : vector<2x8x1xf32> to vector<2x8x8xf32>
    %93 = arith.subf %89, %92 : vector<2x8x8xf32>
    %94 = math.exp %93 : vector<2x8x8xf32>
    %cst_72 = arith.constant dense<0.000000e+00> : vector<2x8xf32>
    %95 = vector.multi_reduction <add>, %94, %cst_72 [2] : vector<2x8x8xf32> to vector<2x8xf32>
    %96 = vector.shape_cast %95 : vector<2x8xf32> to vector<2x8x1xf32>
    %97 = tpu.reciprocal %96 {approx = true} : vector<2x8x1xf32> -> vector<2x8x1xf32>
    %98 = vector.broadcast %97 : vector<2x8x1xf32> to vector<2x8x8xf32>
    %99 = arith.mulf %94, %98 : vector<2x8x8xf32>
    %100 = arith.truncf %99 : vector<2x8x8xf32> to vector<2x8x8xbf16>
    "tpu.trace_start"() <{level = 10 : i32, message = "bqk,bkd->bqd"}> : () -> ()
    %cst_73 = arith.constant dense<0.000000e+00> : vector<2x8x8xf32>
    %101 = tpu.matmul %100, %84, %cst_73 {dimension_numbers = #tpu.dot_dimension_numbers<[2], [1], [1], [2], [0, 0, 0, 1, 1, 2], [0], [0]>} : vector<2x8x8xbf16>, vector<2x8x8xbf16>, vector<2x8x8xf32> -> vector<2x8x8xf32>
    "tpu.trace_stop"() : () -> ()
    %102 = vector.shape_cast %101 : vector<2x8x8xf32> to vector<16x8xf32>
    %103 = arith.truncf %102 : vector<16x8xf32> to vector<16x8xbf16>
    %c0_74 = arith.constant 0 : index
    %c1_75 = arith.constant 1 : index
    %c0_76 = arith.constant 0 : index
    %c0_77 = arith.constant 0 : index
    %104 = vector.load %arg10[%c0_74, %c1_75, %c0_76, %c0_77] : memref<1x4x8x32xbf16, #tpu.memory_space<vmem>>, vector<1x1x8x32xbf16>
    %105 = vector.shape_cast %104 : vector<1x1x8x32xbf16> to vector<8x32xbf16>
    %cst_78 = arith.constant dense<0.000000e+00> : vector<16x32xf32>
    %106 = tpu.matmul %103, %105, %cst_78 {dimension_numbers = #tpu.dot_dimension_numbers<[1], [0], [0], [1], [0, 0, 1, 1], [], []>} : vector<16x8xbf16>, vector<8x32xbf16>, vector<16x32xf32> -> vector<16x32xf32>
    %107 = arith.addf %57, %106 : vector<16x32xf32>
    %c0_79 = arith.constant 0 : index
    %c2 = arith.constant 2 : index
    %c0_80 = arith.constant 0 : index
    %c0_81 = arith.constant 0 : index
    %108 = vector.load %arg4[%c0_79, %c2, %c0_80, %c0_81] : memref<1x4x32x8xbf16, #tpu.memory_space<vmem>>, vector<1x1x32x8xbf16>
    %109 = vector.shape_cast %108 : vector<1x1x32x8xbf16> to vector<32x8xbf16>
    %cst_82 = arith.constant dense<0.000000e+00> : vector<16x8xf32>
    %110 = tpu.matmul %5, %109, %cst_82 {dimension_numbers = #tpu.dot_dimension_numbers<[1], [0], [0], [1], [0, 0, 1, 1], [], []>} : vector<16x32xbf16>, vector<32x8xbf16>, vector<16x8xf32> -> vector<16x8xf32>
    %c0_83 = arith.constant 0 : index
    %c2_84 = arith.constant 2 : index
    %c0_85 = arith.constant 0 : index
    %c0_86 = arith.constant 0 : index
    %111 = vector.load %arg5[%c0_83, %c2_84, %c0_85, %c0_86] : memref<1x4x1x8xf32, #tpu.memory_space<vmem>>, vector<1x1x1x8xf32>
    %112 = vector.shape_cast %111 : vector<1x1x1x8xf32> to vector<1x8xf32>
    %113 = vector.broadcast %112 : vector<1x8xf32> to vector<16x8xf32>
    %114 = arith.addf %110, %113 : vector<16x8xf32>
    %c0_87 = arith.constant 0 : index
    %c2_88 = arith.constant 2 : index
    %c0_89 = arith.constant 0 : index
    %c0_90 = arith.constant 0 : index
    %115 = vector.load %arg6[%c0_87, %c2_88, %c0_89, %c0_90] : memref<1x4x32x8xbf16, #tpu.memory_space<vmem>>, vector<1x1x32x8xbf16>
    %116 = vector.shape_cast %115 : vector<1x1x32x8xbf16> to vector<32x8xbf16>
    %cst_91 = arith.constant dense<0.000000e+00> : vector<16x8xf32>
    %117 = tpu.matmul %5, %116, %cst_91 {dimension_numbers = #tpu.dot_dimension_numbers<[1], [0], [0], [1], [0, 0, 1, 1], [], []>} : vector<16x32xbf16>, vector<32x8xbf16>, vector<16x8xf32> -> vector<16x8xf32>
    %c0_92 = arith.constant 0 : index
    %c2_93 = arith.constant 2 : index
    %c0_94 = arith.constant 0 : index
    %c0_95 = arith.constant 0 : index
    %118 = vector.load %arg7[%c0_92, %c2_93, %c0_94, %c0_95] : memref<1x4x1x8xf32, #tpu.memory_space<vmem>>, vector<1x1x1x8xf32>
    %119 = vector.shape_cast %118 : vector<1x1x1x8xf32> to vector<1x8xf32>
    %120 = vector.broadcast %119 : vector<1x8xf32> to vector<16x8xf32>
    %121 = arith.addf %117, %120 : vector<16x8xf32>
    %c0_96 = arith.constant 0 : index
    %c2_97 = arith.constant 2 : index
    %c0_98 = arith.constant 0 : index
    %c0_99 = arith.constant 0 : index
    %122 = vector.load %arg8[%c0_96, %c2_97, %c0_98, %c0_99] : memref<1x4x32x8xbf16, #tpu.memory_space<vmem>>, vector<1x1x32x8xbf16>
    %123 = vector.shape_cast %122 : vector<1x1x32x8xbf16> to vector<32x8xbf16>
    %cst_100 = arith.constant dense<0.000000e+00> : vector<16x8xf32>
    %124 = tpu.matmul %5, %123, %cst_100 {dimension_numbers = #tpu.dot_dimension_numbers<[1], [0], [0], [1], [0, 0, 1, 1], [], []>} : vector<16x32xbf16>, vector<32x8xbf16>, vector<16x8xf32> -> vector<16x8xf32>
    %c0_101 = arith.constant 0 : index
    %c2_102 = arith.constant 2 : index
    %c0_103 = arith.constant 0 : index
    %c0_104 = arith.constant 0 : index
    %125 = vector.load %arg9[%c0_101, %c2_102, %c0_103, %c0_104] : memref<1x4x1x8xf32, #tpu.memory_space<vmem>>, vector<1x1x1x8xf32>
    %126 = vector.shape_cast %125 : vector<1x1x1x8xf32> to vector<1x8xf32>
    %127 = vector.broadcast %126 : vector<1x8xf32> to vector<16x8xf32>
    %128 = arith.addf %124, %127 : vector<16x8xf32>
    %129 = vector.shape_cast %114 : vector<16x8xf32> to vector<2x8x8xf32>
    %130 = arith.truncf %129 : vector<2x8x8xf32> to vector<2x8x8xbf16>
    %131 = vector.shape_cast %121 : vector<16x8xf32> to vector<2x8x8xf32>
    %132 = arith.truncf %131 : vector<2x8x8xf32> to vector<2x8x8xbf16>
    %133 = vector.shape_cast %128 : vector<16x8xf32> to vector<2x8x8xf32>
    %134 = arith.truncf %133 : vector<2x8x8xf32> to vector<2x8x8xbf16>
    "tpu.trace_start"() <{level = 10 : i32, message = "bqd,bkd->bqk"}> : () -> ()
    %cst_105 = arith.constant dense<0.000000e+00> : vector<2x8x8xf32>
    %135 = tpu.matmul %130, %132, %cst_105 {dimension_numbers = #tpu.dot_dimension_numbers<[2], [2], [1], [1], [0, 0, 0, 1, 1, 1], [0], [0]>} : vector<2x8x8xbf16>, vector<2x8x8xbf16>, vector<2x8x8xf32> -> vector<2x8x8xf32>
    "tpu.trace_stop"() : () -> ()
    %cst_106 = arith.constant 0.353553385 : f32
    %136 = vector.broadcast %cst_106 : f32 to vector<2x8x8xf32>
    %137 = arith.mulf %135, %136 : vector<2x8x8xf32>
    %138 = vector.broadcast %6 : vector<2x1x8xf32> to vector<2x8x8xf32>
    %139 = arith.addf %137, %138 : vector<2x8x8xf32>
    %cst_107 = arith.constant dense<0xFF800000> : vector<2x8xf32>
    %140 = vector.multi_reduction <maximumf>, %139, %cst_107 [2] : vector<2x8x8xf32> to vector<2x8xf32>
    %141 = vector.shape_cast %140 : vector<2x8xf32> to vector<2x8x1xf32>
    %142 = vector.broadcast %141 : vector<2x8x1xf32> to vector<2x8x8xf32>
    %143 = arith.subf %139, %142 : vector<2x8x8xf32>
    %144 = math.exp %143 : vector<2x8x8xf32>
    %cst_108 = arith.constant dense<0.000000e+00> : vector<2x8xf32>
    %145 = vector.multi_reduction <add>, %144, %cst_108 [2] : vector<2x8x8xf32> to vector<2x8xf32>
    %146 = vector.shape_cast %145 : vector<2x8xf32> to vector<2x8x1xf32>
    %147 = tpu.reciprocal %146 {approx = true} : vector<2x8x1xf32> -> vector<2x8x1xf32>
    %148 = vector.broadcast %147 : vector<2x8x1xf32> to vector<2x8x8xf32>
    %149 = arith.mulf %144, %148 : vector<2x8x8xf32>
    %150 = arith.truncf %149 : vector<2x8x8xf32> to vector<2x8x8xbf16>
    "tpu.trace_start"() <{level = 10 : i32, message = "bqk,bkd->bqd"}> : () -> ()
    %cst_109 = arith.constant dense<0.000000e+00> : vector<2x8x8xf32>
    %151 = tpu.matmul %150, %134, %cst_109 {dimension_numbers = #tpu.dot_dimension_numbers<[2], [1], [1], [2], [0, 0, 0, 1, 1, 2], [0], [0]>} : vector<2x8x8xbf16>, vector<2x8x8xbf16>, vector<2x8x8xf32> -> vector<2x8x8xf32>
    "tpu.trace_stop"() : () -> ()
    %152 = vector.shape_cast %151 : vector<2x8x8xf32> to vector<16x8xf32>
    %153 = arith.truncf %152 : vector<16x8xf32> to vector<16x8xbf16>
    %c0_110 = arith.constant 0 : index
    %c2_111 = arith.constant 2 : index
    %c0_112 = arith.constant 0 : index
    %c0_113 = arith.constant 0 : index
    %154 = vector.load %arg10[%c0_110, %c2_111, %c0_112, %c0_113] : memref<1x4x8x32xbf16, #tpu.memory_space<vmem>>, vector<1x1x8x32xbf16>
    %155 = vector.shape_cast %154 : vector<1x1x8x32xbf16> to vector<8x32xbf16>
    %cst_114 = arith.constant dense<0.000000e+00> : vector<16x32xf32>
    %156 = tpu.matmul %153, %155, %cst_114 {dimension_numbers = #tpu.dot_dimension_numbers<[1], [0], [0], [1], [0, 0, 1, 1], [], []>} : vector<16x8xbf16>, vector<8x32xbf16>, vector<16x32xf32> -> vector<16x32xf32>
    %157 = arith.addf %107, %156 : vector<16x32xf32>
    %c0_115 = arith.constant 0 : index
    %c3 = arith.constant 3 : index
    %c0_116 = arith.constant 0 : index
    %c0_117 = arith.constant 0 : index
    %158 = vector.load %arg4[%c0_115, %c3, %c0_116, %c0_117] : memref<1x4x32x8xbf16, #tpu.memory_space<vmem>>, vector<1x1x32x8xbf16>
    %159 = vector.shape_cast %158 : vector<1x1x32x8xbf16> to vector<32x8xbf16>
    %cst_118 = arith.constant dense<0.000000e+00> : vector<16x8xf32>
    %160 = tpu.matmul %5, %159, %cst_118 {dimension_numbers = #tpu.dot_dimension_numbers<[1], [0], [0], [1], [0, 0, 1, 1], [], []>} : vector<16x32xbf16>, vector<32x8xbf16>, vector<16x8xf32> -> vector<16x8xf32>
    %c0_119 = arith.constant 0 : index
    %c3_120 = arith.constant 3 : index
    %c0_121 = arith.constant 0 : index
    %c0_122 = arith.constant 0 : index
    %161 = vector.load %arg5[%c0_119, %c3_120, %c0_121, %c0_122] : memref<1x4x1x8xf32, #tpu.memory_space<vmem>>, vector<1x1x1x8xf32>
    %162 = vector.shape_cast %161 : vector<1x1x1x8xf32> to vector<1x8xf32>
    %163 = vector.broadcast %162 : vector<1x8xf32> to vector<16x8xf32>
    %164 = arith.addf %160, %163 : vector<16x8xf32>
    %c0_123 = arith.constant 0 : index
    %c3_124 = arith.constant 3 : index
    %c0_125 = arith.constant 0 : index
    %c0_126 = arith.constant 0 : index
    %165 = vector.load %arg6[%c0_123, %c3_124, %c0_125, %c0_126] : memref<1x4x32x8xbf16, #tpu.memory_space<vmem>>, vector<1x1x32x8xbf16>
    %166 = vector.shape_cast %165 : vector<1x1x32x8xbf16> to vector<32x8xbf16>
    %cst_127 = arith.constant dense<0.000000e+00> : vector<16x8xf32>
    %167 = tpu.matmul %5, %166, %cst_127 {dimension_numbers = #tpu.dot_dimension_numbers<[1], [0], [0], [1], [0, 0, 1, 1], [], []>} : vector<16x32xbf16>, vector<32x8xbf16>, vector<16x8xf32> -> vector<16x8xf32>
    %c0_128 = arith.constant 0 : index
    %c3_129 = arith.constant 3 : index
    %c0_130 = arith.constant 0 : index
    %c0_131 = arith.constant 0 : index
    %168 = vector.load %arg7[%c0_128, %c3_129, %c0_130, %c0_131] : memref<1x4x1x8xf32, #tpu.memory_space<vmem>>, vector<1x1x1x8xf32>
    %169 = vector.shape_cast %168 : vector<1x1x1x8xf32> to vector<1x8xf32>
    %170 = vector.broadcast %169 : vector<1x8xf32> to vector<16x8xf32>
    %171 = arith.addf %167, %170 : vector<16x8xf32>
    %c0_132 = arith.constant 0 : index
    %c3_133 = arith.constant 3 : index
    %c0_134 = arith.constant 0 : index
    %c0_135 = arith.constant 0 : index
    %172 = vector.load %arg8[%c0_132, %c3_133, %c0_134, %c0_135] : memref<1x4x32x8xbf16, #tpu.memory_space<vmem>>, vector<1x1x32x8xbf16>
    %173 = vector.shape_cast %172 : vector<1x1x32x8xbf16> to vector<32x8xbf16>
    %cst_136 = arith.constant dense<0.000000e+00> : vector<16x8xf32>
    %174 = tpu.matmul %5, %173, %cst_136 {dimension_numbers = #tpu.dot_dimension_numbers<[1], [0], [0], [1], [0, 0, 1, 1], [], []>} : vector<16x32xbf16>, vector<32x8xbf16>, vector<16x8xf32> -> vector<16x8xf32>
    %c0_137 = arith.constant 0 : index
    %c3_138 = arith.constant 3 : index
    %c0_139 = arith.constant 0 : index
    %c0_140 = arith.constant 0 : index
    %175 = vector.load %arg9[%c0_137, %c3_138, %c0_139, %c0_140] : memref<1x4x1x8xf32, #tpu.memory_space<vmem>>, vector<1x1x1x8xf32>
    %176 = vector.shape_cast %175 : vector<1x1x1x8xf32> to vector<1x8xf32>
    %177 = vector.broadcast %176 : vector<1x8xf32> to vector<16x8xf32>
    %178 = arith.addf %174, %177 : vector<16x8xf32>
    %179 = vector.shape_cast %164 : vector<16x8xf32> to vector<2x8x8xf32>
    %180 = arith.truncf %179 : vector<2x8x8xf32> to vector<2x8x8xbf16>
    %181 = vector.shape_cast %171 : vector<16x8xf32> to vector<2x8x8xf32>
    %182 = arith.truncf %181 : vector<2x8x8xf32> to vector<2x8x8xbf16>
    %183 = vector.shape_cast %178 : vector<16x8xf32> to vector<2x8x8xf32>
    %184 = arith.truncf %183 : vector<2x8x8xf32> to vector<2x8x8xbf16>
    "tpu.trace_start"() <{level = 10 : i32, message = "bqd,bkd->bqk"}> : () -> ()
    %cst_141 = arith.constant dense<0.000000e+00> : vector<2x8x8xf32>
    %185 = tpu.matmul %180, %182, %cst_141 {dimension_numbers = #tpu.dot_dimension_numbers<[2], [2], [1], [1], [0, 0, 0, 1, 1, 1], [0], [0]>} : vector<2x8x8xbf16>, vector<2x8x8xbf16>, vector<2x8x8xf32> -> vector<2x8x8xf32>
    "tpu.trace_stop"() : () -> ()
    %cst_142 = arith.constant 0.353553385 : f32
    %186 = vector.broadcast %cst_142 : f32 to vector<2x8x8xf32>
    %187 = arith.mulf %185, %186 : vector<2x8x8xf32>
    %188 = vector.broadcast %6 : vector<2x1x8xf32> to vector<2x8x8xf32>
    %189 = arith.addf %187, %188 : vector<2x8x8xf32>
    %cst_143 = arith.constant dense<0xFF800000> : vector<2x8xf32>
    %190 = vector.multi_reduction <maximumf>, %189, %cst_143 [2] : vector<2x8x8xf32> to vector<2x8xf32>
    %191 = vector.shape_cast %190 : vector<2x8xf32> to vector<2x8x1xf32>
    %192 = vector.broadcast %191 : vector<2x8x1xf32> to vector<2x8x8xf32>
    %193 = arith.subf %189, %192 : vector<2x8x8xf32>
    %194 = math.exp %193 : vector<2x8x8xf32>
    %cst_144 = arith.constant dense<0.000000e+00> : vector<2x8xf32>
    %195 = vector.multi_reduction <add>, %194, %cst_144 [2] : vector<2x8x8xf32> to vector<2x8xf32>
    %196 = vector.shape_cast %195 : vector<2x8xf32> to vector<2x8x1xf32>
    %197 = tpu.reciprocal %196 {approx = true} : vector<2x8x1xf32> -> vector<2x8x1xf32>
    %198 = vector.broadcast %197 : vector<2x8x1xf32> to vector<2x8x8xf32>
    %199 = arith.mulf %194, %198 : vector<2x8x8xf32>
    %200 = arith.truncf %199 : vector<2x8x8xf32> to vector<2x8x8xbf16>
    "tpu.trace_start"() <{level = 10 : i32, message = "bqk,bkd->bqd"}> : () -> ()
    %cst_145 = arith.constant dense<0.000000e+00> : vector<2x8x8xf32>
    %201 = tpu.matmul %200, %184, %cst_145 {dimension_numbers = #tpu.dot_dimension_numbers<[2], [1], [1], [2], [0, 0, 0, 1, 1, 2], [0], [0]>} : vector<2x8x8xbf16>, vector<2x8x8xbf16>, vector<2x8x8xf32> -> vector<2x8x8xf32>
    "tpu.trace_stop"() : () -> ()
    %202 = vector.shape_cast %201 : vector<2x8x8xf32> to vector<16x8xf32>
    %203 = arith.truncf %202 : vector<16x8xf32> to vector<16x8xbf16>
    %c0_146 = arith.constant 0 : index
    %c3_147 = arith.constant 3 : index
    %c0_148 = arith.constant 0 : index
    %c0_149 = arith.constant 0 : index
    %204 = vector.load %arg10[%c0_146, %c3_147, %c0_148, %c0_149] : memref<1x4x8x32xbf16, #tpu.memory_space<vmem>>, vector<1x1x8x32xbf16>
    %205 = vector.shape_cast %204 : vector<1x1x8x32xbf16> to vector<8x32xbf16>
    %cst_150 = arith.constant dense<0.000000e+00> : vector<16x32xf32>
    %206 = tpu.matmul %203, %205, %cst_150 {dimension_numbers = #tpu.dot_dimension_numbers<[1], [0], [0], [1], [0, 0, 1, 1], [], []>} : vector<16x8xbf16>, vector<8x32xbf16>, vector<16x32xf32> -> vector<16x32xf32>
    %207 = arith.addf %157, %206 : vector<16x32xf32>
    %c0_151 = arith.constant 0 : index
    %c0_152 = arith.constant 0 : index
    %c0_153 = arith.constant 0 : index
    %208 = vector.load %arg11[%c0_151, %c0_152, %c0_153] : memref<1x1x32xf32, #tpu.memory_space<vmem>>, vector<1x1x32xf32>
    %209 = vector.shape_cast %208 : vector<1x1x32xf32> to vector<1x32xf32>
    %210 = vector.broadcast %209 : vector<1x32xf32> to vector<16x32xf32>
    %211 = arith.addf %207, %210 : vector<16x32xf32>
    %212 = arith.addf %4, %211 : vector<16x32xf32>
    %c0_154 = arith.constant 0 : index
    %c0_155 = arith.constant 0 : index
    %c0_156 = arith.constant 0 : index
    %213 = vector.load %arg16[%c0_154, %c0_155, %c0_156] : memref<1x1x32xf32, #tpu.memory_space<vmem>>, vector<1x1x32xf32>
    %214 = vector.shape_cast %213 : vector<1x1x32xf32> to vector<1x32xf32>
    %c0_157 = arith.constant 0 : index
    %c0_158 = arith.constant 0 : index
    %c0_159 = arith.constant 0 : index
    %215 = vector.load %arg17[%c0_157, %c0_158, %c0_159] : memref<1x1x32xf32, #tpu.memory_space<vmem>>, vector<1x1x32xf32>
    %216 = vector.shape_cast %215 : vector<1x1x32xf32> to vector<1x32xf32>
    %cst_160 = arith.constant dense<0.000000e+00> : vector<16xf32>
    %217 = vector.multi_reduction <add>, %212, %cst_160 [1] : vector<16x32xf32> to vector<16xf32>
    %218 = vector.shape_cast %217 : vector<16xf32> to vector<16x1xf32>
    %cst_161 = arith.constant 3.200000e+01 : f32
    %219 = vector.broadcast %cst_161 : f32 to vector<16x1xf32>
    %220 = arith.divf %218, %219 : vector<16x1xf32>
    %221 = vector.broadcast %220 : vector<16x1xf32> to vector<16x32xf32>
    %222 = arith.subf %212, %221 : vector<16x32xf32>
    %223 = arith.mulf %222, %222 : vector<16x32xf32>
    %cst_162 = arith.constant dense<0.000000e+00> : vector<16xf32>
    %224 = vector.multi_reduction <add>, %223, %cst_162 [1] : vector<16x32xf32> to vector<16xf32>
    %225 = vector.shape_cast %224 : vector<16xf32> to vector<16x1xf32>
    %cst_163 = arith.constant 3.200000e+01 : f32
    %226 = vector.broadcast %cst_163 : f32 to vector<16x1xf32>
    %227 = arith.divf %225, %226 : vector<16x1xf32>
    %228 = vector.broadcast %220 : vector<16x1xf32> to vector<16x32xf32>
    %229 = arith.subf %212, %228 : vector<16x32xf32>
    %cst_164 = arith.constant 9.99999974E-6 : f32
    %230 = vector.broadcast %cst_164 : f32 to vector<16x1xf32>
    %231 = arith.addf %227, %230 : vector<16x1xf32>
    %232 = math.rsqrt %231 : vector<16x1xf32>
    %233 = vector.broadcast %232 : vector<16x1xf32> to vector<16x32xf32>
    %234 = arith.mulf %229, %233 : vector<16x32xf32>
    %235 = vector.broadcast %214 : vector<1x32xf32> to vector<16x32xf32>
    %236 = arith.mulf %234, %235 : vector<16x32xf32>
    %237 = vector.broadcast %216 : vector<1x32xf32> to vector<16x32xf32>
    %238 = arith.addf %236, %237 : vector<16x32xf32>
    %239 = arith.truncf %238 : vector<16x32xf32> to vector<16x32xbf16>
    %c0_165 = arith.constant 0 : index
    %c0_166 = arith.constant 0 : index
    %c0_167 = arith.constant 0 : index
    %240 = vector.load %arg12[%c0_165, %c0_166, %c0_167] : memref<1x32x64xbf16, #tpu.memory_space<vmem>>, vector<1x32x64xbf16>
    %241 = vector.shape_cast %240 : vector<1x32x64xbf16> to vector<32x64xbf16>
    %cst_168 = arith.constant dense<0.000000e+00> : vector<16x64xf32>
    %242 = tpu.matmul %239, %241, %cst_168 {dimension_numbers = #tpu.dot_dimension_numbers<[1], [0], [0], [1], [0, 0, 1, 1], [], []>} : vector<16x32xbf16>, vector<32x64xbf16>, vector<16x64xf32> -> vector<16x64xf32>
    %c0_169 = arith.constant 0 : index
    %c0_170 = arith.constant 0 : index
    %c0_171 = arith.constant 0 : index
    %243 = vector.load %arg13[%c0_169, %c0_170, %c0_171] : memref<1x1x64xf32, #tpu.memory_space<vmem>>, vector<1x1x64xf32>
    %244 = vector.shape_cast %243 : vector<1x1x64xf32> to vector<1x64xf32>
    %245 = vector.broadcast %244 : vector<1x64xf32> to vector<16x64xf32>
    %246 = arith.addf %242, %245 : vector<16x64xf32>
    %cst_172 = arith.constant 0.000000e+00 : f32
    %247 = vector.broadcast %cst_172 : f32 to vector<16x64xf32>
    %248 = arith.maximumf %246, %247 : vector<16x64xf32>
    %249 = arith.truncf %248 : vector<16x64xf32> to vector<16x64xbf16>
    %c0_173 = arith.constant 0 : index
    %c0_174 = arith.constant 0 : index
    %c0_175 = arith.constant 0 : index
    %250 = vector.load %arg14[%c0_173, %c0_174, %c0_175] : memref<1x64x32xbf16, #tpu.memory_space<vmem>>, vector<1x64x32xbf16>
    %251 = vector.shape_cast %250 : vector<1x64x32xbf16> to vector<64x32xbf16>
    %cst_176 = arith.constant dense<0.000000e+00> : vector<16x32xf32>
    %252 = tpu.matmul %249, %251, %cst_176 {dimension_numbers = #tpu.dot_dimension_numbers<[1], [0], [0], [1], [0, 0, 1, 1], [], []>} : vector<16x64xbf16>, vector<64x32xbf16>, vector<16x32xf32> -> vector<16x32xf32>
    %c0_177 = arith.constant 0 : index
    %c0_178 = arith.constant 0 : index
    %c0_179 = arith.constant 0 : index
    %253 = vector.load %arg15[%c0_177, %c0_178, %c0_179] : memref<1x1x32xf32, #tpu.memory_space<vmem>>, vector<1x1x32xf32>
    %254 = vector.shape_cast %253 : vector<1x1x32xf32> to vector<1x32xf32>
    %255 = vector.broadcast %254 : vector<1x32xf32> to vector<16x32xf32>
    %256 = arith.addf %252, %255 : vector<16x32xf32>
    %257 = arith.addf %238, %256 : vector<16x32xf32>
    %c0_180 = arith.constant 0 : index
    %c0_181 = arith.constant 0 : index
    %c0_182 = arith.constant 0 : index
    %258 = vector.load %arg18[%c0_180, %c0_181, %c0_182] : memref<1x1x32xf32, #tpu.memory_space<vmem>>, vector<1x1x32xf32>
    %259 = vector.shape_cast %258 : vector<1x1x32xf32> to vector<1x32xf32>
    %c0_183 = arith.constant 0 : index
    %c0_184 = arith.constant 0 : index
    %c0_185 = arith.constant 0 : index
    %260 = vector.load %arg19[%c0_183, %c0_184, %c0_185] : memref<1x1x32xf32, #tpu.memory_space<vmem>>, vector<1x1x32xf32>
    %261 = vector.shape_cast %260 : vector<1x1x32xf32> to vector<1x32xf32>
    %cst_186 = arith.constant dense<0.000000e+00> : vector<16xf32>
    %262 = vector.multi_reduction <add>, %257, %cst_186 [1] : vector<16x32xf32> to vector<16xf32>
    %263 = vector.shape_cast %262 : vector<16xf32> to vector<16x1xf32>
    %cst_187 = arith.constant 3.200000e+01 : f32
    %264 = vector.broadcast %cst_187 : f32 to vector<16x1xf32>
    %265 = arith.divf %263, %264 : vector<16x1xf32>
    %266 = vector.broadcast %265 : vector<16x1xf32> to vector<16x32xf32>
    %267 = arith.subf %257, %266 : vector<16x32xf32>
    %268 = arith.mulf %267, %267 : vector<16x32xf32>
    %cst_188 = arith.constant dense<0.000000e+00> : vector<16xf32>
    %269 = vector.multi_reduction <add>, %268, %cst_188 [1] : vector<16x32xf32> to vector<16xf32>
    %270 = vector.shape_cast %269 : vector<16xf32> to vector<16x1xf32>
    %cst_189 = arith.constant 3.200000e+01 : f32
    %271 = vector.broadcast %cst_189 : f32 to vector<16x1xf32>
    %272 = arith.divf %270, %271 : vector<16x1xf32>
    %273 = vector.broadcast %265 : vector<16x1xf32> to vector<16x32xf32>
    %274 = arith.subf %257, %273 : vector<16x32xf32>
    %cst_190 = arith.constant 9.99999974E-6 : f32
    %275 = vector.broadcast %cst_190 : f32 to vector<16x1xf32>
    %276 = arith.addf %272, %275 : vector<16x1xf32>
    %277 = math.rsqrt %276 : vector<16x1xf32>
    %278 = vector.broadcast %277 : vector<16x1xf32> to vector<16x32xf32>
    %279 = arith.mulf %274, %278 : vector<16x32xf32>
    %280 = vector.broadcast %259 : vector<1x32xf32> to vector<16x32xf32>
    %281 = arith.mulf %279, %280 : vector<16x32xf32>
    %282 = vector.broadcast %261 : vector<1x32xf32> to vector<16x32xf32>
    %283 = arith.addf %281, %282 : vector<16x32xf32>
    %284 = vector.shape_cast %283 : vector<16x32xf32> to vector<2x8x32xf32>
    %c0_191 = arith.constant 0 : index
    %c0_192 = arith.constant 0 : index
    %c0_193 = arith.constant 0 : index
    %285 = vector.load %arg20[%c0_191, %c0_192, %c0_193] : memref<2x8x32xf32, #tpu.memory_space<vmem>>, vector<2x8x32xf32>
    tpu.vector_store %arg20[%c0_191, %c0_192, %c0_193], %284 {strides = array<i32>} : memref<2x8x32xf32, #tpu.memory_space<vmem>>, vector<2x8x32xf32>,
    return
  }
  func.func @transform_0(%arg0: i32, %arg1: i32) -> (i32, i32, i32) {
    %c0_i32 = arith.constant 0 : i32
    %c0_i32_0 = arith.constant 0 : i32
    %c0_i32_1 = arith.constant 0 : i32
    return %arg0, %c0_i32, %c0_i32_0 : i32, i32, i32
  }
  func.func @transform_1(%arg0: i32, %arg1: i32) -> (i32, i32, i32) {
    %c0_i32 = arith.constant 0 : i32
    %c0_i32_0 = arith.constant 0 : i32
    %c0_i32_1 = arith.constant 0 : i32
    return %arg0, %c0_i32, %c0_i32_0 : i32, i32, i32
  }
  func.func @transform_2(%arg0: i32, %arg1: i32) -> (i32, i32, i32, i32) {
    %c0_i32 = arith.constant 0 : i32
    %c0_i32_0 = arith.constant 0 : i32
    %c0_i32_1 = arith.constant 0 : i32
    %c0_i32_2 = arith.constant 0 : i32
    return %arg1, %c0_i32, %c0_i32_0, %c0_i32_1 : i32, i32, i32, i32
  }
  func.func @transform_3(%arg0: i32, %arg1: i32) -> (i32, i32, i32, i32) {
    %c0_i32 = arith.constant 0 : i32
    %c0_i32_0 = arith.constant 0 : i32
    %c0_i32_1 = arith.constant 0 : i32
    %c0_i32_2 = arith.constant 0 : i32
    return %arg1, %c0_i32, %c0_i32_0, %c0_i32_1 : i32, i32, i32, i32
  }
  func.func @transform_4(%arg0: i32, %arg1: i32) -> (i32, i32, i32, i32) {
    %c0_i32 = arith.constant 0 : i32
    %c0_i32_0 = arith.constant 0 : i32
    %c0_i32_1 = arith.constant 0 : i32
    %c0_i32_2 = arith.constant 0 : i32
    return %arg1, %c0_i32, %c0_i32_0, %c0_i32_1 : i32, i32, i32, i32
  }
  func.func @transform_5(%arg0: i32, %arg1: i32) -> (i32, i32, i32, i32) {
    %c0_i32 = arith.constant 0 : i32
    %c0_i32_0 = arith.constant 0 : i32
    %c0_i32_1 = arith.constant 0 : i32
    %c0_i32_2 = arith.constant 0 : i32
    return %arg1, %c0_i32, %c0_i32_0, %c0_i32_1 : i32, i32, i32, i32
  }
  func.func @transform_6(%arg0: i32, %arg1: i32) -> (i32, i32, i32, i32) {
    %c0_i32 = arith.constant 0 : i32
    %c0_i32_0 = arith.constant 0 : i32
    %c0_i32_1 = arith.constant 0 : i32
    %c0_i32_2 = arith.constant 0 : i32
    return %arg1, %c0_i32, %c0_i32_0, %c0_i32_1 : i32, i32, i32, i32
  }
  func.func @transform_7(%arg0: i32, %arg1: i32) -> (i32, i32, i32, i32) {
    %c0_i32 = arith.constant 0 : i32
    %c0_i32_0 = arith.constant 0 : i32
    %c0_i32_1 = arith.constant 0 : i32
    %c0_i32_2 = arith.constant 0 : i32
    return %arg1, %c0_i32, %c0_i32_0, %c0_i32_1 : i32, i32, i32, i32
  }
  func.func @transform_8(%arg0: i32, %arg1: i32) -> (i32, i32, i32, i32) {
    %c0_i32 = arith.constant 0 : i32
    %c0_i32_0 = arith.constant 0 : i32
    %c0_i32_1 = arith.constant 0 : i32
    %c0_i32_2 = arith.constant 0 : i32
    return %arg1, %c0_i32, %c0_i32_0, %c0_i32_1 : i32, i32, i32, i32
  }
  func.func @transform_9(%arg0: i32, %arg1: i32) -> (i32, i32, i32) {
    %c0_i32 = arith.constant 0 : i32
    %c0_i32_0 = arith.constant 0 : i32
    %c0_i32_1 = arith.constant 0 : i32
    return %arg1, %c0_i32, %c0_i32_0 : i32, i32, i32
  }
  func.func @transform_10(%arg0: i32, %arg1: i32) -> (i32, i32, i32) {
    %c0_i32 = arith.constant 0 : i32
    %c0_i32_0 = arith.constant 0 : i32
    %c0_i32_1 = arith.constant 0 : i32
    return %arg1, %c0_i32, %c0_i32_0 : i32, i32, i32
  }
  func.func @transform_11(%arg0: i32, %arg1: i32) -> (i32, i32, i32) {
    %c0_i32 = arith.constant 0 : i32
    %c0_i32_0 = arith.constant 0 : i32
    %c0_i32_1 = arith.constant 0 : i32
    return %arg1, %c0_i32, %c0_i32_0 : i32, i32, i32
  }
  func.func @transform_12(%arg0: i32, %arg1: i32) -> (i32, i32, i32) {
    %c0_i32 = arith.constant 0 : i32
    %c0_i32_0 = arith.constant 0 : i32
    %c0_i32_1 = arith.constant 0 : i32
    return %arg1, %c0_i32, %c0_i32_0 : i32, i32, i32
  }
  func.func @transform_13(%arg0: i32, %arg1: i32) -> (i32, i32, i32) {
    %c0_i32 = arith.constant 0 : i32
    %c0_i32_0 = arith.constant 0 : i32
    %c0_i32_1 = arith.constant 0 : i32
    return %arg1, %c0_i32, %c0_i32_0 : i32, i32, i32
  }
  func.func @transform_14(%arg0: i32, %arg1: i32) -> (i32, i32, i32) {
    %c0_i32 = arith.constant 0 : i32
    %c0_i32_0 = arith.constant 0 : i32
    %c0_i32_1 = arith.constant 0 : i32
    return %arg1, %c0_i32, %c0_i32_0 : i32, i32, i32
  }
  func.func @transform_15(%arg0: i32, %arg1: i32) -> (i32, i32, i32) {
    %c0_i32 = arith.constant 0 : i32
    %c0_i32_0 = arith.constant 0 : i32
    %c0_i32_1 = arith.constant 0 : i32
    return %arg1, %c0_i32, %c0_i32_0 : i32, i32, i32
  }
  func.func @transform_16(%arg0: i32, %arg1: i32) -> (i32, i32, i32) {
    %c0_i32 = arith.constant 0 : i32
    %c0_i32_0 = arith.constant 0 : i32
    %c0_i32_1 = arith.constant 0 : i32
    return %arg1, %c0_i32, %c0_i32_0 : i32, i32, i32
  }
  func.func @transform_17(%arg0: i32, %arg1: i32) -> (i32, i32, i32) {
    %c0_i32 = arith.constant 0 : i32
    %c0_i32_0 = arith.constant 0 : i32
    %c0_i32_1 = arith.constant 0 : i32
    return %arg1, %c0_i32, %c0_i32_0 : i32, i32, i32
  }
  func.func @transform_18(%arg0: i32, %arg1: i32) -> (i32, i32, i32) {
    %c0_i32 = arith.constant 0 : i32
    %c0_i32_0 = arith.constant 0 : i32
    %c0_i32_1 = arith.constant 0 : i32
    return %arg0, %c0_i32, %c0_i32_0 : i32, i32, i32
  }
}

</mosaic_0001>

<bundles_post_ra>
// kernel: tpu_custom_call.1
= control target key start
LH: loop header
LB: loop body
LE: loop exit
PB: predicated region body
PF: predicated region fallthrough
CT: control target
= control target key end

     0   :  { %s4487_s0 = inlined_call_operand.vmem [shape: f32[2,8,32], index: 0, kind: input, shape index: {}]   ;;  %s4488_s1 = inlined_call_operand.vmem [shape: f32[2,1,8], index: 1, kind: input, shape index: {}]   ;;  %s4489_s2 = inlined_call_operand.vmem [shape: bf16[2,4,32,8], index: 2, kind: input, shape index: {}]   ;;  %s4490_s3 = inlined_call_operand.vmem [shape: f32[2,4,1,8], index: 3, kind: input, shape index: {}]   ;;  %s4491_s4 = inlined_call_operand.vmem [shape: bf16[2,4,32,8], index: 4, kind: input, shape index: {}]   ;;  %s4492_s5 = inlined_call_operand.vmem [shape: f32[2,4,1,8], index: 5, kind: input, shape index: {}]   ;;  %s4493_s6 = inlined_call_operand.vmem [shape: bf16[2,4,32,8], index: 6, kind: input, shape index: {}]   ;;  %s4494_s7 = inlined_call_operand.vmem [shape: f32[2,4,1,8], index: 7, kind: input, shape index: {}]   ;;  %s4495_s8 = inlined_call_operand.vmem [shape: bf16[2,4,8,32], index: 8, kind: input, shape index: {}]   ;;  %s4496_s9 = inlined_call_operand.vmem [shape: f32[2,1,32], index: 9, kind: input, shape index: {}]   ;;  %s4497_s10 = inlined_call_operand.vmem [shape: bf16[2,32,64], index: 10, kind: input, shape index: {}]   ;;  %s4498_s11 = inlined_call_operand.vmem [shape: f32[2,1,64], index: 11, kind: input, shape index: {}]   ;;  %s4499_s12 = inlined_call_operand.vmem [shape: bf16[2,64,32], index: 12, kind: input, shape index: {}]   ;;  %s4500_s13 = inlined_call_operand.vmem [shape: f32[2,1,32], index: 13, kind: input, shape index: {}]   ;;  %s4501_s14 = inlined_call_operand.vmem [shape: f32[2,1,32], index: 14, kind: input, shape index: {}]   ;;  %s4502_s15 = inlined_call_operand.vmem [shape: f32[2,1,32], index: 15, kind: input, shape index: {}]   ;;  %s4503_s16 = inlined_call_operand.vmem [shape: f32[2,1,32], index: 16, kind: input, shape index: {}]   ;;  %s4504_s17 = inlined_call_operand.vmem [shape: f32[2,1,32], index: 17, kind: input, shape index: {}]   ;;  %s4505_s18 = inlined_call_operand.hbm [shape: f32[2,8,32], index: 18, kind: output, shape index: {}]  }
   0x1   :  { %4514 = sst [smem:[#allocation12_spill]] %s4487_s0 }
   0x2   :  { %4515 = sst [smem:[#allocation13_spill]] %s4488_s1 }
   0x3   :  { %4516 = sst [smem:[#allocation14_spill]] %s4489_s2 }
   0x4   :  { %4517 = sst [smem:[#allocation15_spill]] %s4490_s3 }
   0x5   :  { %4518 = sst [smem:[#allocation16_spill]] %s4491_s4 }
   0x6   :  { %4519 = sst [smem:[#allocation17_spill]] %s4492_s5 }
   0x7   :  { %4520 = sst [smem:[#allocation18_spill]] %s4493_s6 }
   0x8   :  { %4521 = sst [smem:[#allocation19_spill]] %s4494_s7 }
   0x9   :  { %4522 = sst [smem:[#allocation20_spill]] %s4495_s8 }
   0xa   :  { %4523 = sst [smem:[#allocation21_spill]] %s4497_s10 }
   0xb   :  { %4524 = sst [smem:[#allocation22_spill]] %s4499_s12 }
   0xc   :  { %4525 = sst [smem:[#allocation23_spill]] %s4505_s18 }
   0xd   :  { %23 = vsyncpa [#allocation3], 0  ;;  %s4015_s27 = smov 0   ;;  %s4017_s28 = smov 0  }
   0xe   :  { %s4019_s29 = smov 0  }
   0xf LB: > { %4526 = sst [smem:[#allocation5_spill]] %s3905_s27  ;;  %s38_s0 = sadd.s32 1, %s3909_s28  ;;  %s3913_s29 = sphi %s4019_s29, %s29_s29   ;;  %s3909_s28 = sphi %s4017_s28, %s4558_s28   ;;  %s3905_s27 = sphi %s4015_s27, %s4557_s27  }
  0x10   : > { %4527 = sst [smem:[#allocation6_spill]] %s3909_s28  ;;  %p39_p0 = scmp.ge.s32.totalorder %s38_s0, 2 }
  0x11   : > { %4528 = sst [smem:[#allocation7_spill]] %s3913_s29  ;;  %p3276_p1 = scmp.ge.s32.totalorder %s3913_s29, 1 }
  0x12   : > { %p679_p2 = scmp.lt.s32.totalorder %s3913_s29, 3  ;;  %s4560_s0 = smov (%p39_p0, %s38_s0), 0 }
  0x13   : > { %4529 = sst [smem:[#allocation8_spill]] %s4560_s0 }
  0x14   : > { %p680_p3 = pnand %p3276_p1, %p679_p2 }
  0x16   : > { %683 = sbr.rel (%p680_p3) target bundleno = 4789 (0x12b5), region = 92 }
  0x1b   : > { %p806_p4 = scmp.lt.s32.totalorder %s3905_s27, 1  ;;  %s4530_s2 = sld [smem:[#allocation14_spill]] }
  0x1c   : > { %s4532_s3 = sld [smem:[#allocation15_spill]] }
  0x1d   : > { %s4038_s19 = scalar_select %p806_p4, %s3905_s27, 1 }
  0x1e   : > { %s4534_s4 = sld [smem:[#allocation16_spill]] }
  0x1f   : > { %s3430_s1 = sshll.u32 %s4038_s19, 6  ;;  %s3279_s20 = sshll.u32 %s4038_s19, 2 }
  0x20   : > { %s4536_s5 = sld [smem:[#allocation17_spill]]  ;;  %s3435_s24 = sshll.u32 %s4038_s19, 5 }
  0x21   : > { %s4045_s23 = scalar_lea.vmem %s4530_s2, %s3430_s1  ;;  %s4537_s6 = sld [smem:[#allocation18_spill]] }
  0x22   : > { %4531 = sst [smem:[#allocation9_spill]] %s4045_s23  ;;  %s4050_s26 = scalar_lea.vmem %s4532_s3, %s3279_s20 }
  0x23   : > { %4533 = sst [smem:[#allocation10_spill]] %s4050_s26  ;;  %s3433_s26 = sshll.u32 %s4038_s19, 4 }
  0x24   : > { %s4055_s28 = scalar_lea.vmem %s4534_s4, %s3430_s1  ;;  %s4538_s7 = sld [smem:[#allocation19_spill]] }
  0x25   : > { %4535 = sst [smem:[#allocation11_spill]] %s4055_s28 }
  0x26   : > { %s4060_s27 = scalar_lea.vmem %s4536_s5, %s3279_s20  ;;  %s4539_s8 = sld [smem:[#allocation20_spill]] }
  0x27   : > { %s4065_s2 = scalar_lea.vmem %s4537_s6, %s3430_s1  ;;  %s4540_s10 = sld [smem:[#allocation21_spill]] }
  0x28   : > { %s4541_s12 = sld [smem:[#allocation22_spill]]  ;;  %s859_s5 = scalar_lea.vmem %s4501_s14, %s4038_s19 }
  0x29   : > { %s4542_s25 = sld [smem:[#allocation5_spill]] }
  0x2a   : > { %s4070_s3 = scalar_lea.vmem %s4538_s7, %s3279_s20  ;;  %s865_s20 = scalar_lea.vmem %s4503_s16, %s4038_s19 }
  0x2c   : > { %s4080_s18 = scalar_lea.vmem %s4539_s8, %s3433_s26  ;;  %s862_s8 = scalar_lea.vmem %s4502_s15, %s4038_s19 }
  0x2d   : > { %s4085_s1 = scalar_lea.vmem %s4540_s10, %s3433_s26 }
  0x2e   : > { %s4095_s30 = scalar_lea.vmem %s4541_s12, %s3435_s24  ;;  %s868_s24 = scalar_lea.vmem %s4504_s17, %s4038_s19 }
  0x2f   : > { %p3292_p5 = scmp.ne.s32.totalorder %s4542_s25, 0 }
  0x30   : > { %s4543_s28 = sld [smem:[#allocation12_spill]] (!%p3292_p5) }
  0x31   : > { %874 = sbr.rel (%p3292_p5) target bundleno = 57 (0x39), region = 96 }
  0x36   : > { %s4544_s12 = smov %s4543_s28  ;;  %v875_v0 = vld [vmem:[%s4543_s28] sm:$0xff]  ;;  %vm877_vm0 = vcmask 261120  }
  0x37   : > { %v876_v1 = vld [vmem:[%s4544_s12 + $0x8] sm:$0xff]  ;;  %878 = vst.msk [vmem:[#allocation2] sm:$0xff] %vm877_vm0, %v875_v0 }
  0x38   : > { %879 = vst.msk [vmem:[#allocation2 + $0x8] sm:$0xff] %vm877_vm0, %v876_v1 }
  0x39 PF: > { %s4545_s26 = sld [smem:[#allocation11_spill]]  ;;  %v3915_v3 = vmov 0.0   ;;  %vm3916_vm1 = vmmov 0   ;;  %vm908_vm2 = vcmask 261120   ;;  %v3795_v10 = vld [vmem:[%s4065_s2 + $0x8] sm:$0xff]   ;;  %v3796_v11 = vld [vmem:[%s4065_s2] sm:$0xff]  }
  0x3a   : > { %s4546_s29 = sld [smem:[#allocation9_spill]]  ;;  %3528 = vmatprep.subr.bf16.mxu1 %v3915_v3  ;;  %3520 = vmatprep.subr.bf16.mxu0 %v3915_v3  ;;  %v3297_v12 = vld [vmem:[%s4060_s27] ss:$0 sm:$0xff]  ;;  %vm1087_vm3 = vcmask 64512   ;;  %vm1223_vm4 = vcmask 1043456   ;;  %vm2930_vm5 = vcmask 523264  }
  0x3b   : > { %3532 = vmatprep.mubr.msk.bf16.mxu1 %vm3916_vm1, %v3915_v3  ;;  %3524 = vmatprep.mubr.msk.bf16.mxu0 %vm3916_vm1, %v3915_v3  ;;  %s4547_s10 = sld [smem:[#allocation10_spill]]  ;;  %v3301_v32 = vld [vmem:[%s4070_s3] ss:$0 sm:$0xff]  ;;  %s3917_s25 = smov [#allocation2]  }
  0x3c   : > { %s4548_s22 = sld [smem:[#allocation13_spill]] }
  0x3e   : > { %v880_v7 = vld [vmem:[#allocation2] sm:$0xff] }
  0x3f   : > { %v3791_v2 = vld [vmem:[%s4545_s26 + $0x8] sm:$0xff]   ;;  %v3793_v5 = vld [vmem:[%s4545_s26] sm:$0xff]  }
  0x40   : > { %v3792_v4 = vld [vmem:[%s4546_s29 + $0x8] sm:$0xff]   ;;  %3529 = vmatpush3.bf16.msra.mxu1 %v3791_v2  ;;  %v3794_v6 = vld [vmem:[%s4546_s29] sm:$0xff]  }
  0x41   : > { %3521 = vmatpush3.bf16.msra.mxu0 %v3792_v4  ;;  %3530 = vmatprep.subr.bf16.mxu1 %v3915_v3  ;;  %v881_v8 = vld [vmem:[#allocation2 + $0x8] sm:$0xff]  ;;  %v3293_v16 = vld [vmem:[%s4547_s10] ss:$0 sm:$0xff] }
  0x42   : > { %3522 = vmatprep.subr.bf16.mxu0 %v3915_v3  ;;  %v4136_v9 = vpack.c.bf16 %v881_v8, %v880_v7  ;;  %v4176_v47 = vld [vmem:[%s4548_s22 + $0x1] ss:$0 sm:$0xff]  ;;  %v4181_v52 = vld [vmem:[%s4548_s22] ss:$0 sm:$0xff] }
  0x44   : > { %3531 = vmatpush3.bf16.msra.mxu1 %v3793_v5 }
  0x45   : > { %3523 = vmatpush3.bf16.msra.mxu0 %v3794_v6  ;;  %3544 = vmatprep.subr.bf16.mxu1 %v3915_v3 }
  0x46   : > { %3536 = vmatprep.subr.bf16.mxu0 %v3915_v3 }
  0x47   : > { %3533 = vmatmul.mubr.msk.bf16.vlgmr.msra.gmra.mxu1 %vm908_vm2, %v4136_v9 }
  0x48   : > { %3525 = vmatmul.mubr.msk.bf16.vlgmr.msra.gmra.mxu0 %vm908_vm2, %v4136_v9  ;;  %3546 = vmatprep.mubr.msk.bf16.mxu1 %vm3916_vm1, %v3915_v3 }
  0x49   : > { %3537 = vmatpush3.bf16.msra.mxu0 %v3795_v10  ;;  %3540 = vmatprep.mubr.msk.bf16.mxu0 %vm3916_vm1, %v3915_v3 }
  0x4a   : > { %3538 = vmatprep.subr.bf16.mxu0 %v3915_v3 }
  0x4d   : > { %3539 = vmatpush3.bf16.msra.mxu0 %v3796_v11  ;;  %v3797_v11 = vld [vmem:[%s4545_s26 + $0x18] sm:$0xff]  }
  0x4e   : > { %3550 = vmatprep.subr.bf16.mxu0 %v3915_v3 }
  0x50   : > { %3541 = vmatmul.mubr.msk.bf16.vlgmr.msra.gmra.mxu0 %vm908_vm2, %v4136_v9 }
  0x51   : > { %3552 = vmatprep.mubr.msk.bf16.mxu0 %vm3916_vm1, %v3915_v3 }
 0x107   : > { %v1010_v13 = vpop.f32.mrf.mxu1 }
 0x108   : > { %v1011_v14 = vadd.f32 %v3297_v12, %v1010_v13  ;;  %v946_v15 = vpop.f32.mrf.mxu0 }
 0x109   : > { %v3534_v17 = vpop.f32.mrf.mxu1  ;;  %v947_v22 = vadd.f32 %v3293_v16, %v946_v15  ;;  %v3798_v15 = vld [vmem:[%s4546_s29 + $0x18] sm:$0xff]  }
 0x10a   : > { %v1083_v18 = vpack.c.bf16 %v1011_v14, %v1011_v14  ;;  %v3526_v19 = vpop.f32.mrf.mxu0 }
 0x10b   : > { %v1013_v20 = vpop.f32.mrf.mxu1  ;;  %v1081_v28 = vpack.c.bf16 %v947_v22, %v947_v22  ;;  %v3801_v19 = vld [vmem:[%s4065_s2 + $0x18] sm:$0xff]  }
 0x10c   : > { %v1092_v21 = vsel %vm1087_vm3, %v1083_v18, 0  ;;  %v1014_v23 = vadd.f32 %v3297_v12, %v1013_v20  ;;  %v949_v24 = vpop.f32.mrf.mxu0  ;;  %v3800_v18 = vld [vmem:[%s4546_s29 + $0x10] sm:$0xff]  }
 0x10d   : > { %v3535_v25 = vpop.f32.mrf.mxu1  ;;  %3545 = vmatpush3.bf16.xpose.msra.mxu1 %v1092_v21  ;;  %v950_v30 = vadd.f32 %v3293_v16, %v949_v24  ;;  %v3799_v16 = vld [vmem:[%s4545_s26 + $0x10] sm:$0xff]  }
 0x10e   : > { %v1084_v26 = vpack.c.bf16 %v1014_v23, %v1014_v23  ;;  %v3527_v27 = vpop.f32.mrf.mxu0  ;;  %3556 = vmatprep.subr.bf16.mxu1 %v3915_v3  ;;  %v3802_v20 = vld [vmem:[%s4065_s2 + $0x10] sm:$0xff]  }
 0x10f   : > { %v1082_v31 = vpack.c.bf16 %v950_v30, %v950_v30 }
 0x110   : > { %v1138_v29 = vsel %vm1087_vm3, %v1084_v26, 0  ;;  %v1074_v33 = vpop.f32.mrf.mxu0 }
 0x111   : > { %3551 = vmatpush3.bf16.xpose.msra.mxu0 %v1138_v29  ;;  %v1075_v34 = vadd.f32 %v3301_v32, %v1074_v33 }
 0x112   : > { %3562 = vmatprep.subr.bf16.mxu0 %v3915_v3  ;;  %v3542_v35 = vpop.f32.mrf.mxu0 }
 0x113   : > { %v1085_v36 = vpack.c.bf16 %v1075_v34, %v1075_v34  ;;  %v3316_v34 = vld [vmem:[%s4547_s10 + $0x1] ss:$0 sm:$0xff] }
 0x114   : > { %3547 = vmatmul.mubr.msk.bf16.vlgmr.msra.gmra.mxu1 %vm1087_vm3, %v1081_v28  ;;  %v1077_v37 = vpop.f32.mrf.mxu0  ;;  %v3325_v28 = vld [vmem:[%s4060_s27 + $0x1] ss:$0 sm:$0xff] }
 0x115   : > { %3558 = vmatprep.mubr.msk.bf16.mxu1 %vm3916_vm1, %v3915_v3  ;;  %v1225_v38 = vsel %vm1223_vm4, %v1085_v36, 0  ;;  %v1078_v39 = vadd.f32 %v3301_v32, %v1077_v37 }
 0x116   : > { %v3543_v40 = vpop.f32.mrf.mxu0  ;;  %3557 = vmatpush3.bf16.msra.mxu1 %v1225_v38 }
 0x117   : > { %v1086_v41 = vpack.c.bf16 %v1078_v39, %v1078_v39  ;;  %3568 = vmatprep.subr.bf16.mxu1 %v3915_v3 }
 0x118   : > { %3553 = vmatmul.mubr.msk.bf16.vlgmr.msra.gmra.mxu0 %vm1087_vm3, %v1082_v31 }
 0x119   : > { %3564 = vmatprep.mubr.msk.bf16.mxu0 %vm3916_vm1, %v3915_v3  ;;  %v1271_v42 = vsel %vm1223_vm4, %v1086_v41, 0 }
 0x11a   : > { %3563 = vmatpush3.bf16.msra.mxu0 %v1271_v42 }
 0x11b   : > { %3576 = vmatprep.subr.bf16.mxu0 %v3915_v3 }
 0x1d4   : > { %v1128_v43 = vpop.f32.mrf.mxu1 }
 0x1d5   : > { %v1180_v48 = vmul.f32 0.35355338, %v1128_v43 }
 0x1d6   : > { %v3548_v44 = vpop.f32.mrf.mxu1 }
 0x1d7   : > { %v1194_v56 = vadd.f32 %v4181_v52, %v1180_v48 }
 0x1d8   : > { %v1131_v45 = vpop.f32.mrf.mxu1  ;;  %v1174_v46 = vpop.f32.mrf.mxu0 }
 0x1d9   : > { %v1181_v49 = vmul.f32 0.35355338, %v1174_v46  ;;  %v1196_v58 = vsel %vm1087_vm3, %v1194_v56, -inf }
 0x1da   : > { %v3549_v50 = vpop.f32.mrf.mxu1  ;;  %v3554_v51 = vpop.f32.mrf.mxu0 }
 0x1db   : > { %v1195_v53 = vadd.f32 %v4176_v47, %v1181_v49  ;;  %v3334_v51 = vld [vmem:[%s4070_s3 + $0x1] ss:$0 sm:$0xff] }
 0x1dc   : > { %v1177_v54 = vpop.f32.mrf.mxu0 }
 0x1dd   : > { %v1199_v55 = vsel %vm1087_vm3, %v1195_v53, -inf }
 0x1de   : > { %1200 = vmax.xlane.f32.xlu0 %v1199_v55  ;;  %v3555_v57 = vpop.f32.mrf.mxu0 }
 0x1e2   : > { %1197 = vmax.xlane.f32.xlu0 %v1196_v58 }
 0x267   : > { %v1201_v59 = vpop.xlane.xlu0 %1200 }
 0x268   : > { %v1203_v60 = vsub.f32 %v1195_v53, %v1201_v59 }
 0x26a   : > { %v1206_v61 = vmul.f32 1.442695, %v1203_v60 }
 0x26b   : > { %v1198_v62 = vpop.xlane.xlu0 %1197 }
 0x26c   : > { %3821 = vpow2.f32 %v1206_v61  ;;  %v1202_v63 = vsub.f32 %v1194_v56, %v1198_v62 }
 0x26e   : > { %v1204_v0 = vmul.f32 1.442695, %v1202_v63 }
 0x270   : > { %3823 = vpow2.f32 %v1204_v0 }
 0x279   : > { %v3822_v1 = vpop.eup %3821 }
 0x27a   : > { %v1211_v2 = vsel %vm1087_vm3, %v3822_v1, 0.0 }
 0x27b   : > { %1212 = vadd.xlane.f32.xlu1 %v1211_v2 }
 0x27d   : > { %v3824_v4 = vpop.eup %3823 }
 0x27e   : > { %v1208_v5 = vsel %vm1087_vm3, %v3824_v4, 0.0 }
 0x27f   : > { %1209 = vadd.xlane.f32.xlu1 %v1208_v5 }
 0x304   : > { %v1213_v6 = vpop.xlane.xlu1 %1212 }
 0x305   : > { %3825 = vrcp.f32 %v1213_v6 }
 0x308   : > { %v1210_v7 = vpop.xlane.xlu1 %1209 }
 0x309   : > { %3827 = vrcp.f32 %v1210_v7 }
 0x312   : > { %v3826_v8 = vpop.eup %3825 }
 0x313   : > { %v1217_v10 = vmul.f32 %v3826_v8, %v3822_v1 }
 0x315   : > { %v1219_v12 = vpack.c.bf16 %v1217_v10, %v1217_v10 }
 0x316   : > { %v3828_v13 = vpop.eup %3827 }
 0x317   : > { %3565 = vmatmul.mubr.msk.bf16.vlgmr.msra.gmra.mxu0 %vm1087_vm3, %v1219_v12  ;;  %v1216_v14 = vmul.f32 %v3828_v13, %v3824_v4 }
 0x318   : > { %3577 = vmatpush3.bf16.msra.mxu0 %v3797_v11  ;;  %3580 = vmatprep.mubr.msk.bf16.mxu0 %vm3916_vm1, %v3915_v3 }
 0x319   : > { %v1218_v17 = vpack.c.bf16 %v1216_v14, %v1216_v14  ;;  %3578 = vmatprep.subr.bf16.mxu0 %v3915_v3 }
 0x31b   : > { %3559 = vmatmul.mubr.msk.bf16.vlgmr.msra.gmra.mxu1 %vm1087_vm3, %v1218_v17 }
 0x31c   : > { %3569 = vmatpush3.bf16.msra.mxu1 %v3798_v15  ;;  %3579 = vmatpush3.bf16.msra.mxu0 %v3799_v16 }
 0x31d   : > { %3570 = vmatprep.subr.bf16.mxu1 %v3915_v3  ;;  %3572 = vmatprep.mubr.msk.bf16.mxu1 %vm3916_vm1, %v3915_v3 }
 0x31e   : > { %3592 = vmatprep.subr.bf16.mxu0 %v3915_v3 }
 0x31f   : > { %3581 = vmatmul.mubr.msk.bf16.vlgmr.msra.gmra.mxu0 %vm908_vm2, %v4136_v9 }
 0x320   : > { %3571 = vmatpush3.bf16.msra.mxu1 %v3800_v18  ;;  %3594 = vmatprep.mubr.msk.bf16.mxu0 %vm3916_vm1, %v3915_v3 }
 0x321   : > { %3584 = vmatprep.subr.bf16.mxu1 %v3915_v3 }
 0x323   : > { %3573 = vmatmul.mubr.msk.bf16.vlgmr.msra.gmra.mxu1 %vm908_vm2, %v4136_v9 }
 0x324   : > { %3588 = vmatprep.mubr.msk.bf16.mxu1 %vm3916_vm1, %v3915_v3  ;;  %3585 = vmatpush3.bf16.msra.mxu1 %v3801_v19 }
 0x325   : > { %3586 = vmatprep.subr.bf16.mxu1 %v3915_v3 }
 0x328   : > { %3587 = vmatpush3.bf16.msra.mxu1 %v3802_v20 }
 0x329   : > { %3598 = vmatprep.subr.bf16.mxu1 %v3915_v3 }
 0x32b   : > { %3589 = vmatmul.mubr.msk.bf16.vlgmr.msra.gmra.mxu1 %vm908_vm2, %v4136_v9 }
 0x32c   : > { %3600 = vmatprep.mubr.msk.bf16.mxu1 %vm3916_vm1, %v3915_v3 }
 0x3d7   : > { %v4219_v21 = vpop.f32.mrf.mxu0 }
 0x3d9   : > { %v3566_v22 = vpop.f32.mrf.mxu0 }
 0x3db   : > { %v4221_v23 = vpop.f32.mrf.mxu1  ;;  %v1310_v24 = vpop.f32.mrf.mxu0 }
 0x3dc   : > { %v1313_v25 = vpack.c.bf16 %v4219_v21, %v4221_v23  ;;  %v3342_v21 = vld [vmem:[%s4080_s18 + $0x4] sm:$0xf] }
 0x3dd   : > { %v3560_v26 = vpop.f32.mrf.mxu1  ;;  %v3567_v27 = vpop.f32.mrf.mxu0  ;;  %v1738_v23 = vsel %vm1223_vm4, %v3342_v21, 0 }
 0x3df   : > { %v1264_v29 = vpop.f32.mrf.mxu1  ;;  %v1440_v30 = vpop.f32.mrf.mxu0 }
 0x3e0   : > { %v1441_v31 = vadd.f32 %v3325_v28, %v1440_v30 }
 0x3e1   : > { %v3561_v32 = vpop.f32.mrf.mxu1  ;;  %v3582_v33 = vpop.f32.mrf.mxu0 }
 0x3e2   : > { %v1515_v35 = vpack.c.bf16 %v1441_v31, %v1441_v31 }
 0x3e3   : > { %v1374_v36 = vpop.f32.mrf.mxu1  ;;  %v1443_v37 = vpop.f32.mrf.mxu0 }
 0x3e4   : > { %v1523_v38 = vsel %vm1087_vm3, %v1515_v35, 0  ;;  %v1375_v39 = vadd.f32 %v3316_v34, %v1374_v36  ;;  %v1444_v40 = vadd.f32 %v3325_v28, %v1443_v37 }
 0x3e5   : > { %v3574_v41 = vpop.f32.mrf.mxu1  ;;  %v3583_v42 = vpop.f32.mrf.mxu0  ;;  %3593 = vmatpush3.bf16.xpose.msra.mxu0 %v1523_v38  ;;  %v3803_v38 = vld [vmem:[%s4545_s26 + $0x28] sm:$0xff]  }
 0x3e6   : > { %v1516_v43 = vpack.c.bf16 %v1444_v40, %v1444_v40  ;;  %3604 = vmatprep.subr.bf16.mxu0 %v3915_v3  ;;  %v1513_v45 = vpack.c.bf16 %v1375_v39, %v1375_v39  ;;  %v3804_v39 = vld [vmem:[%s4545_s26 + $0x20] sm:$0xff]  }
 0x3e7   : > { %v1377_v44 = vpop.f32.mrf.mxu1 }
 0x3e8   : > { %v1569_v46 = vsel %vm1087_vm3, %v1516_v43, 0  ;;  %v1378_v49 = vadd.f32 %v3316_v34, %v1377_v44  ;;  %v1314_v34 = vld [vmem:[%s4080_s18] sm:$0xf]  ;;  %v3805_v43 = vld [vmem:[%s4546_s29 + $0x28] sm:$0xff]  }
 0x3e9   : > { %v3575_v48 = vpop.f32.mrf.mxu1  ;;  %3599 = vmatpush3.bf16.xpose.msra.mxu1 %v1569_v46  ;;  %v1785_v37 = vsel %vm1223_vm4, %v1314_v34, 0 }
 0x3ea   : > { %3610 = vmatprep.subr.bf16.mxu1 %v3915_v3  ;;  %v1514_v50 = vpack.c.bf16 %v1378_v49, %v1378_v49  ;;  %v3806_v49 = vld [vmem:[%s4546_s29 + $0x20] sm:$0xff]  }
 0x3eb   : > { %v1506_v53 = vpop.f32.mrf.mxu1 }
 0x3ec   : > { %3595 = vmatmul.mubr.msk.bf16.vlgmr.msra.gmra.mxu0 %vm1087_vm3, %v1513_v45  ;;  %v1507_v54 = vadd.f32 %v3334_v51, %v1506_v53  ;;  %v3807_v53 = vld [vmem:[%s4065_s2 + $0x28] sm:$0xff]  }
 0x3ed   : > { %3606 = vmatprep.mubr.msk.bf16.mxu0 %vm3916_vm1, %v3915_v3  ;;  %v3590_v55 = vpop.f32.mrf.mxu1 }
 0x3ee   : > { %v1517_v56 = vpack.c.bf16 %v1507_v54, %v1507_v54 }
 0x3ef   : > { %v1509_v57 = vpop.f32.mrf.mxu1 }
 0x3f0   : > { %3601 = vmatmul.mubr.msk.bf16.vlgmr.msra.gmra.mxu1 %vm1087_vm3, %v1514_v50  ;;  %v1643_v58 = vsel %vm1223_vm4, %v1517_v56, 0  ;;  %v1510_v59 = vadd.f32 %v3334_v51, %v1509_v57  ;;  %v3359_v57 = vld [vmem:[%s4060_s27 + $0x2] ss:$0 sm:$0xff] }
 0x3f1   : > { %3612 = vmatprep.mubr.msk.bf16.mxu1 %vm3916_vm1, %v3915_v3  ;;  %v3591_v60 = vpop.f32.mrf.mxu1  ;;  %3605 = vmatpush3.bf16.msra.mxu0 %v1643_v58 }
 0x3f2   : > { %v1518_v61 = vpack.c.bf16 %v1510_v59, %v1510_v59  ;;  %3616 = vmatprep.subr.bf16.mxu0 %v3915_v3 }
 0x3f4   : > { %v1689_v62 = vsel %vm1223_vm4, %v1518_v61, 0 }
 0x3f5   : > { %3611 = vmatpush3.bf16.msra.mxu1 %v1689_v62 }
 0x3f6   : > { %3622 = vmatprep.subr.bf16.mxu1 %v3915_v3 }
 0x4ac   : > { %v1559_v63 = vpop.f32.mrf.mxu0 }
 0x4ad   : > { %v1611_v0 = vmul.f32 0.35355338, %v1559_v63 }
 0x4ae   : > { %v3596_v1 = vpop.f32.mrf.mxu0 }
 0x4af   : > { %v1613_v2 = vadd.f32 %v4181_v52, %v1611_v0 }
 0x4b0   : > { %v1562_v4 = vpop.f32.mrf.mxu0  ;;  %v1605_v5 = vpop.f32.mrf.mxu1 }
 0x4b1   : > { %v1612_v6 = vmul.f32 0.35355338, %v1605_v5  ;;  %v1615_v7 = vsel %vm1087_vm3, %v1613_v2, -inf  ;;  %v3808_v4 = vld [vmem:[%s4065_s2 + $0x20] sm:$0xff]  }
 0x4b2   : > { %v3602_v8 = vpop.f32.mrf.mxu1  ;;  %1616 = vmax.xlane.f32.xlu0 %v1615_v7  ;;  %v3597_v10 = vpop.f32.mrf.mxu0 }
 0x4b3   : > { %v1614_v11 = vadd.f32 %v4176_v47, %v1612_v6 }
 0x4b4   : > { %v1608_v12 = vpop.f32.mrf.mxu1 }
 0x4b5   : > { %v1618_v13 = vsel %vm1087_vm3, %v1614_v11, -inf }
 0x4b6   : > { %1619 = vmax.xlane.f32.xlu1 %v1618_v13  ;;  %v3603_v14 = vpop.f32.mrf.mxu1 }
 0x53b   : > { %v1617_v15 = vpop.xlane.xlu0 %1616 }
 0x53c   : > { %v1621_v16 = vsub.f32 %v1613_v2, %v1617_v15 }
 0x53e   : > { %v1623_v17 = vmul.f32 1.442695, %v1621_v16 }
 0x53f   : > { %v1620_v18 = vpop.xlane.xlu1 %1619 }
 0x540   : > { %3829 = vpow2.f32 %v1623_v17  ;;  %v1622_v19 = vsub.f32 %v1614_v11, %v1620_v18  ;;  %v3350_v11 = vld [vmem:[%s4547_s10 + $0x2] ss:$0 sm:$0xff] }
 0x542   : > { %v1625_v20 = vmul.f32 1.442695, %v1622_v19 }
 0x544   : > { %3831 = vpow2.f32 %v1625_v20  ;;  %v3368_v20 = vld [vmem:[%s4070_s3 + $0x2] ss:$0 sm:$0xff] }
 0x54d   : > { %v3830_v22 = vpop.eup %3829 }
 0x54e   : > { %v1627_v24 = vsel %vm1087_vm3, %v3830_v22, 0.0 }
 0x54f   : > { %1628 = vadd.xlane.f32.xlu0 %v1627_v24 }
 0x551   : > { %v3832_v26 = vpop.eup %3831 }
 0x552   : > { %v1630_v27 = vsel %vm1087_vm3, %v3832_v26, 0.0 }
 0x553   : > { %1631 = vadd.xlane.f32.xlu1 %v1630_v27 }
 0x5d8   : > { %v1629_v28 = vpop.xlane.xlu0 %1628 }
 0x5d9   : > { %3833 = vrcp.f32 %v1629_v28 }
 0x5dc   : > { %v1632_v29 = vpop.xlane.xlu1 %1631 }
 0x5dd   : > { %3835 = vrcp.f32 %v1632_v29 }
 0x5e6   : > { %v3834_v30 = vpop.eup %3833 }
 0x5e7   : > { %v1635_v31 = vmul.f32 %v3834_v30, %v3830_v22 }
 0x5e9   : > { %v1637_v32 = vpack.c.bf16 %v1635_v31, %v1635_v31 }
 0x5ea   : > { %v3836_v33 = vpop.eup %3835 }
 0x5eb   : > { %3607 = vmatmul.mubr.msk.bf16.vlgmr.msra.gmra.mxu0 %vm1087_vm3, %v1637_v32  ;;  %v1636_v35 = vmul.f32 %v3836_v33, %v3832_v26 }
 0x5ec   : > { %3618 = vmatprep.mubr.msk.bf16.mxu0 %vm3916_vm1, %v3915_v3  ;;  %3617 = vmatpush3.bf16.msra.mxu0 %v1738_v23 }
 0x5ed   : > { %v1638_v36 = vpack.c.bf16 %v1636_v35, %v1636_v35  ;;  %3628 = vmatprep.subr.bf16.mxu0 %v3915_v3 }
 0x5ef   : > { %3613 = vmatmul.mubr.msk.bf16.vlgmr.msra.gmra.mxu1 %vm1087_vm3, %v1638_v36 }
 0x5f0   : > { %3623 = vmatpush3.bf16.msra.mxu1 %v1785_v37  ;;  %3624 = vmatprep.mubr.msk.bf16.mxu1 %vm3916_vm1, %v3915_v3 }
 0x5f1   : > { %3636 = vmatprep.subr.bf16.mxu1 %v3915_v3 }
 0x5f7   : > { %3625 = vmatmul.mubr.msk.bf16.vlgmr.msra.gmra.mxu1 %vm1087_vm3, %v1313_v25 }
 0x5f8   : > { %3637 = vmatpush3.bf16.msra.mxu1 %v3803_v38  ;;  %3640 = vmatprep.mubr.msk.bf16.mxu1 %vm3916_vm1, %v3915_v3 }
 0x5f9   : > { %3638 = vmatprep.subr.bf16.mxu1 %v3915_v3 }
 0x5fc   : > { %3639 = vmatpush3.bf16.msra.mxu1 %v3804_v39 }
 0x5fd   : > { %3652 = vmatprep.subr.bf16.mxu1 %v3915_v3 }
 0x5ff   : > { %3641 = vmatmul.mubr.msk.bf16.vlgmr.msra.gmra.mxu1 %vm908_vm2, %v4136_v9 }
 0x600   : > { %3654 = vmatprep.mubr.msk.bf16.mxu1 %vm3916_vm1, %v3915_v3 }
 0x6ab   : > { %v1679_v25 = vpop.f32.mrf.mxu0 }
 0x6ad   : > { %v3608_v40 = vpop.f32.mrf.mxu0 }
 0x6af   : > { %v1682_v41 = vpop.f32.mrf.mxu0  ;;  %v1725_v42 = vpop.f32.mrf.mxu1 }
 0x6b0   : > { %v1731_v44 = vpack.c.bf16 %v1725_v42, %v1679_v25 }
 0x6b1   : > { %v3609_v45 = vpop.f32.mrf.mxu0  ;;  %v3614_v46 = vpop.f32.mrf.mxu1 }
 0x6b2   : > { %3619 = vmatmul.mubr.msk.bf16.vlgmr.msra.gmra.mxu0 %vm1087_vm3, %v1731_v44 }
 0x6b3   : > { %v1728_v48 = vpop.f32.mrf.mxu1  ;;  %3629 = vmatpush3.bf16.msra.mxu0 %v3805_v43  ;;  %3632 = vmatprep.mubr.msk.bf16.mxu0 %vm3916_vm1, %v3915_v3 }
 0x6b4   : > { %3630 = vmatprep.subr.bf16.mxu0 %v3915_v3 }
 0x6b5   : > { %v3615_v50 = vpop.f32.mrf.mxu1 }
 0x6b7   : > { %v4280_v51 = vpop.f32.mrf.mxu1  ;;  %3631 = vmatpush3.bf16.msra.mxu0 %v3806_v49 }
 0x6b8   : > { %3644 = vmatprep.subr.bf16.mxu0 %v3915_v3 }
 0x6b9   : > { %v3626_v54 = vpop.f32.mrf.mxu1 }
 0x6ba   : > { %3633 = vmatmul.mubr.msk.bf16.vlgmr.msra.gmra.mxu0 %vm908_vm2, %v4136_v9 }
 0x6bb   : > { %v4286_v55 = vpop.f32.mrf.mxu1  ;;  %3645 = vmatpush3.bf16.msra.mxu0 %v3807_v53  ;;  %3648 = vmatprep.mubr.msk.bf16.mxu0 %vm3916_vm1, %v3915_v3 }
 0x6bc   : > { %3646 = vmatprep.subr.bf16.mxu0 %v3915_v3 }
 0x6bd   : > { %v3627_v56 = vpop.f32.mrf.mxu1 }
 0x6bf   : > { %v1953_v58 = vpop.f32.mrf.mxu1  ;;  %3647 = vmatpush3.bf16.msra.mxu0 %v3808_v4  ;;  %v3376_v4 = vld [vmem:[%s4080_s18 + $0x8] sm:$0xf] }
 0x6c0   : > { %v1954_v59 = vadd.f32 %v3359_v57, %v1953_v58  ;;  %3658 = vmatprep.subr.bf16.mxu0 %v3915_v3 }
 0x6c1   : > { %v3642_v60 = vpop.f32.mrf.mxu1 }
 0x6c2   : > { %v2028_v61 = vpack.c.bf16 %v1954_v59, %v1954_v59  ;;  %3649 = vmatmul.mubr.msk.bf16.vlgmr.msra.gmra.mxu0 %vm908_vm2, %v4136_v9 }
 0x6c3   : > { %v1956_v62 = vpop.f32.mrf.mxu1  ;;  %3660 = vmatprep.mubr.msk.bf16.mxu0 %vm3916_vm1, %v3915_v3 }
 0x6c4   : > { %v2036_v63 = vsel %vm1087_vm3, %v2028_v61, 0  ;;  %v1957_v1 = vadd.f32 %v3359_v57, %v1956_v62 }
 0x6c5   : > { %v3643_v0 = vpop.f32.mrf.mxu1  ;;  %3653 = vmatpush3.bf16.xpose.msra.mxu1 %v2036_v63 }
 0x6c6   : > { %3664 = vmatprep.subr.bf16.mxu1 %v3915_v3  ;;  %v2029_v2 = vpack.c.bf16 %v1957_v1, %v1957_v1 }
 0x6c8   : > { %v2082_v5 = vsel %vm1087_vm3, %v2029_v2, 0 }
 0x6c9   : > { %3659 = vmatpush3.bf16.xpose.msra.mxu0 %v2082_v5  ;;  %v2251_v5 = vsel %vm1223_vm4, %v3376_v4, 0 }
 0x6ca   : > { %3670 = vmatprep.subr.bf16.mxu0 %v3915_v3 }
 0x772   : > { %v4302_v6 = vpop.f32.mrf.mxu0 }
 0x774   : > { %v3620_v7 = vpop.f32.mrf.mxu0 }
 0x775   : > { %v3810_v7 = vld [vmem:[%s4546_s29 + $0x38] sm:$0xff]  }
 0x776   : > { %v4304_v8 = vpop.f32.mrf.mxu0 }
 0x778   : > { %v3621_v10 = vpop.f32.mrf.mxu0 }
 0x779   : > { %v3812_v10 = vld [vmem:[%s4546_s29 + $0x30] sm:$0xff]   ;;  %s4552_s29 = sld [smem:[#allocation7_spill]] }
 0x77a   : > { %v1887_v12 = vpop.f32.mrf.mxu0 }
 0x77b   : > { %v1888_v13 = vadd.f32 %v3350_v11, %v1887_v12 }
 0x77c   : > { %v3634_v14 = vpop.f32.mrf.mxu0 }
 0x77d   : > { %v2026_v15 = vpack.c.bf16 %v1888_v13, %v1888_v13 }
 0x77e   : > { %v1890_v16 = vpop.f32.mrf.mxu0 }
 0x77f   : > { %v1891_v17 = vadd.f32 %v3350_v11, %v1890_v16  ;;  %3655 = vmatmul.mubr.msk.bf16.vlgmr.msra.gmra.mxu1 %vm1087_vm3, %v2026_v15  ;;  %v3809_v15 = vld [vmem:[%s4545_s26 + $0x38] sm:$0xff]  }
 0x780   : > { %v3635_v18 = vpop.f32.mrf.mxu0  ;;  %3666 = vmatprep.mubr.msk.bf16.mxu1 %vm3916_vm1, %v3915_v3 }
 0x781   : > { %v2027_v19 = vpack.c.bf16 %v1891_v17, %v1891_v17 }
 0x782   : > { %v2019_v22 = vpop.f32.mrf.mxu0 }
 0x783   : > { %3661 = vmatmul.mubr.msk.bf16.vlgmr.msra.gmra.mxu0 %vm1087_vm3, %v2027_v19  ;;  %v2020_v24 = vadd.f32 %v3368_v20, %v2019_v22 }
 0x784   : > { %3672 = vmatprep.mubr.msk.bf16.mxu0 %vm3916_vm1, %v3915_v3  ;;  %v3650_v26 = vpop.f32.mrf.mxu0 }
 0x785   : > { %v2030_v27 = vpack.c.bf16 %v2020_v24, %v2020_v24  ;;  %v3813_v24 = vld [vmem:[%s4065_s2 + $0x38] sm:$0xff]   ;;  %v3814_v26 = vld [vmem:[%s4065_s2 + $0x30] sm:$0xff]   ;;  %s4549_s2 = scalar_lea.vmem %s4496_s9, %s4038_s19 }
 0x786   : > { %v2022_v28 = vpop.f32.mrf.mxu0 }
 0x787   : > { %v2156_v29 = vsel %vm1223_vm4, %v2030_v27, 0  ;;  %v2023_v30 = vadd.f32 %v3368_v20, %v2022_v28  ;;  %v3811_v20 = vld [vmem:[%s4545_s26 + $0x30] sm:$0xff]  }
 0x788   : > { %v3651_v31 = vpop.f32.mrf.mxu0  ;;  %3665 = vmatpush3.bf16.msra.mxu1 %v2156_v29 }
 0x789   : > { %v2031_v32 = vpack.c.bf16 %v2023_v30, %v2023_v30  ;;  %3676 = vmatprep.subr.bf16.mxu1 %v3915_v3  ;;  %v1822_v31 = vadd.f32 %v4280_v51, %v4302_v6 }
 0x78b   : > { %v2202_v33 = vsel %vm1223_vm4, %v2031_v32, 0 }
 0x78c   : > { %3671 = vmatpush3.bf16.msra.mxu0 %v2202_v33 }
 0x78d   : > { %3682 = vmatprep.subr.bf16.mxu0 %v3915_v3 }
 0x83f   : > { %v2072_v34 = vpop.f32.mrf.mxu1 }
 0x840   : > { %v2124_v35 = vmul.f32 0.35355338, %v2072_v34 }
 0x841   : > { %v3656_v36 = vpop.f32.mrf.mxu1 }
 0x842   : > { %v2126_v37 = vadd.f32 %v4181_v52, %v2124_v35  ;;  %v1825_v35 = vadd.f32 %v4286_v55, %v4304_v8 }
 0x843   : > { %v2075_v38 = vpop.f32.mrf.mxu1  ;;  %v2118_v39 = vpop.f32.mrf.mxu0 }
 0x844   : > { %v2125_v21 = vmul.f32 0.35355338, %v2118_v39  ;;  %v2128_v23 = vsel %vm1087_vm3, %v2126_v37, -inf  ;;  %v3392_v38 = vld [vmem:[%s4060_s27 + $0x3] ss:$0 sm:$0xff]  ;;  %s4553_s27 = sadd.s32 4294967295, %s4552_s29  }
 0x845   : > { %2129 = vmax.xlane.f32.xlu0 %v2128_v23  ;;  %v3657_v25 = vpop.f32.mrf.mxu1  ;;  %v3662_v40 = vpop.f32.mrf.mxu0  ;;  %p4462_p6 = scmp.eq.s32.totalorder %s4553_s27, 1 }
 0x846   : > { %v2127_v41 = vadd.f32 %v4176_v47, %v2125_v21  ;;  %v3383_v25 = vld [vmem:[%s4547_s10 + $0x3] ss:$0 sm:$0xff] }
 0x847   : > { %v2121_v42 = vpop.f32.mrf.mxu0 }
 0x848   : > { %v2131_v43 = vsel %vm1087_vm3, %v2127_v41, -inf }
 0x849   : > { %2132 = vmax.xlane.f32.xlu1 %v2131_v43  ;;  %v3663_v44 = vpop.f32.mrf.mxu0 }
 0x8ce   : > { %v2130_v45 = vpop.xlane.xlu0 %2129 }
 0x8cf   : > { %v2134_v46 = vsub.f32 %v2126_v37, %v2130_v45 }
 0x8d1   : > { %v2136_v48 = vmul.f32 1.442695, %v2134_v46 }
 0x8d2   : > { %v2133_v49 = vpop.xlane.xlu1 %2132 }
 0x8d3   : > { %3837 = vpow2.f32 %v2136_v48  ;;  %v2135_v50 = vsub.f32 %v2127_v41, %v2133_v49  ;;  %v3401_v48 = vld [vmem:[%s4070_s3 + $0x3] ss:$0 sm:$0xff]  ;;  %s3032_s3 = sshll.u32 %s3917_s25, 4  ;;  %s3033_s3 = int_to_ptr.vmem [resolvable:$true] %s3032_s3 }
 0x8d4   : > { %p3870_p10 = scmp.lt.s32.totalorder %s3033_s3, %s3033_s3 }
 0x8d5   : > { %v2138_v53 = vmul.f32 1.442695, %v2135_v50 }
 0x8d7   : > { %3839 = vpow2.f32 %v2138_v53 }
 0x8e0   : > { %v3838_v54 = vpop.eup %3837 }
 0x8e1   : > { %v2140_v56 = vsel %vm1087_vm3, %v3838_v54, 0.0 }
 0x8e2   : > { %2141 = vadd.xlane.f32.xlu0 %v2140_v56 }
 0x8e4   : > { %v3840_v57 = vpop.eup %3839 }
 0x8e5   : > { %v2143_v58 = vsel %vm1087_vm3, %v3840_v57, 0.0 }
 0x8e6   : > { %2144 = vadd.xlane.f32.xlu1 %v2143_v58 }
 0x96b   : > { %v2142_v59 = vpop.xlane.xlu0 %2141 }
 0x96c   : > { %3841 = vrcp.f32 %v2142_v59 }
 0x96f   : > { %v2145_v60 = vpop.xlane.xlu1 %2144 }
 0x970   : > { %3843 = vrcp.f32 %v2145_v60 }
 0x979   : > { %v3842_v61 = vpop.eup %3841 }
 0x97a   : > { %v2148_v62 = vmul.f32 %v3842_v61, %v3838_v54 }
 0x97c   : > { %v2150_v63 = vpack.c.bf16 %v2148_v62, %v2148_v62 }
 0x97d   : > { %v3844_v0 = vpop.eup %3843 }
 0x97e   : > { %3667 = vmatmul.mubr.msk.bf16.vlgmr.msra.gmra.mxu1 %vm1087_vm3, %v2150_v63  ;;  %v2149_v1 = vmul.f32 %v3844_v0, %v3840_v57 }
 0x97f   : > { %3678 = vmatprep.mubr.msk.bf16.mxu1 %vm3916_vm1, %v3915_v3  ;;  %3677 = vmatpush3.bf16.msra.mxu1 %v2251_v5 }
 0x980   : > { %v2151_v2 = vpack.c.bf16 %v2149_v1, %v2149_v1  ;;  %3690 = vmatprep.subr.bf16.mxu1 %v3915_v3 }
 0x982   : > { %3673 = vmatmul.mubr.msk.bf16.vlgmr.msra.gmra.mxu0 %vm1087_vm3, %v2151_v2 }
 0x983   : > { %3686 = vmatprep.mubr.msk.bf16.mxu0 %vm3916_vm1, %v3915_v3  ;;  %3683 = vmatpush3.bf16.msra.mxu0 %v3810_v7 }
 0x984   : > { %3684 = vmatprep.subr.bf16.mxu0 %v3915_v3 }
 0x987   : > { %3685 = vmatpush3.bf16.msra.mxu0 %v3812_v10 }
 0x988   : > { %3698 = vmatprep.subr.bf16.mxu0 %v3915_v3 }
 0x98a   : > { %3687 = vmatmul.mubr.msk.bf16.vlgmr.msra.gmra.mxu0 %vm908_vm2, %v4136_v9 }
 0x98b   : > { %3702 = vmatprep.mubr.msk.bf16.mxu0 %vm3916_vm1, %v3915_v3  ;;  %3699 = vmatpush3.bf16.msra.mxu0 %v3813_v24 }
 0x98c   : > { %3700 = vmatprep.subr.bf16.mxu0 %v3915_v3 }
 0x98f   : > { %3701 = vmatpush3.bf16.msra.mxu0 %v3814_v26 }
 0x990   : > { %3712 = vmatprep.subr.bf16.mxu0 %v3915_v3 }
 0x992   : > { %3703 = vmatmul.mubr.msk.bf16.vlgmr.msra.gmra.mxu0 %vm908_vm2, %v4136_v9 }
 0x993   : > { %3714 = vmatprep.mubr.msk.bf16.mxu0 %vm3916_vm1, %v3915_v3 }
 0xa3e   : > { %v2192_v11 = vpop.f32.mrf.mxu1 }
 0xa40   : > { %v3668_v12 = vpop.f32.mrf.mxu1 }
 0xa42   : > { %v2195_v13 = vpop.f32.mrf.mxu1  ;;  %v2238_v14 = vpop.f32.mrf.mxu0 }
 0xa43   : > { %v2244_v16 = vpack.c.bf16 %v2238_v14, %v2192_v11 }
 0xa44   : > { %v3669_v17 = vpop.f32.mrf.mxu1  ;;  %v3674_v18 = vpop.f32.mrf.mxu0 }
 0xa45   : > { %3679 = vmatmul.mubr.msk.bf16.vlgmr.msra.gmra.mxu1 %vm1087_vm3, %v2244_v16 }
 0xa46   : > { %v2241_v19 = vpop.f32.mrf.mxu0  ;;  %3691 = vmatpush3.bf16.msra.mxu1 %v3809_v15  ;;  %3694 = vmatprep.mubr.msk.bf16.mxu1 %vm3916_vm1, %v3915_v3 }
 0xa47   : > { %3692 = vmatprep.subr.bf16.mxu1 %v3915_v3 }
 0xa48   : > { %v3675_v22 = vpop.f32.mrf.mxu0 }
 0xa4a   : > { %3693 = vmatpush3.bf16.msra.mxu1 %v3811_v20  ;;  %v2355_v27 = vpop.f32.mrf.mxu0 }
 0xa4b   : > { %3706 = vmatprep.subr.bf16.mxu1 %v3915_v3  ;;  %v2356_v6 = vadd.f32 %v3383_v25, %v2355_v27 }
 0xa4c   : > { %v3688_v28 = vpop.f32.mrf.mxu0 }
 0xa4d   : > { %3695 = vmatmul.mubr.msk.bf16.vlgmr.msra.gmra.mxu1 %vm908_vm2, %v4136_v9  ;;  %v2494_v55 = vpack.c.bf16 %v2356_v6, %v2356_v6 }
 0xa4e   : > { %3708 = vmatprep.mubr.msk.bf16.mxu1 %vm3916_vm1, %v3915_v3  ;;  %v2358_v29 = vpop.f32.mrf.mxu0 }
 0xa4f   : > { %v2359_v45 = vadd.f32 %v3383_v25, %v2358_v29 }
 0xa50   : > { %v3689_v30 = vpop.f32.mrf.mxu0 }
 0xa51   : > { %v2495_v46 = vpack.c.bf16 %v2359_v45, %v2359_v45 }
 0xa52   : > { %v2487_v49 = vpop.f32.mrf.mxu0 }
 0xa53   : > { %v2488_v50 = vadd.f32 %v3401_v48, %v2487_v49 }
 0xa54   : > { %v3704_v53 = vpop.f32.mrf.mxu0 }
 0xa55   : > { %v2498_v54 = vpack.c.bf16 %v2488_v50, %v2488_v50 }
 0xa56   : > { %v2490_v56 = vpop.f32.mrf.mxu0 }
 0xa57   : > { %v2624_v57 = vsel %vm1223_vm4, %v2498_v54, 0  ;;  %v2491_v58 = vadd.f32 %v3401_v48, %v2490_v56  ;;  %v3861_v48 = vld [vmem:[#allocation2] sm:$0xff]  ;;  %v3862_v56 = vld [vmem:[#allocation2 + $0x8] sm:$0xff] }
 0xa58   : > { %v3705_v59 = vpop.f32.mrf.mxu0 }
 0xa59   : > { %v2499_v60 = vpack.c.bf16 %v2491_v58, %v2491_v58 }
 0xa5b   : > { %v2670_v61 = vsel %vm1223_vm4, %v2499_v60, 0 }
 0xb05   : > { %v2287_v32 = vpop.f32.mrf.mxu1 }
 0xb06   : > { %v4362_v33 = vadd.f32 %v2287_v32, %v1822_v31 }
 0xb07   : > { %v3680_v34 = vpop.f32.mrf.mxu1 }
 0xb09   : > { %v2290_v36 = vpop.f32.mrf.mxu1 }
 0xb0a   : > { %v4366_v37 = vadd.f32 %v2290_v36, %v1825_v35  ;;  %v3409_v36 = vld [vmem:[%s4080_s18 + $0xc] sm:$0xf] }
 0xb0b   : > { %v3681_v9 = vpop.f32.mrf.mxu1 }
 0xb0c   : > { %v2719_v9 = vsel %vm1223_vm4, %v3409_v36, 0 }
 0xb0d   : > { %v2421_v39 = vpop.f32.mrf.mxu1 }
 0xb0e   : > { %v2422_v21 = vadd.f32 %v3392_v38, %v2421_v39 }
 0xb0f   : > { %v3696_v23 = vpop.f32.mrf.mxu1 }
 0xb10   : > { %v2496_v40 = vpack.c.bf16 %v2422_v21, %v2422_v21 }
 0xb11   : > { %v2424_v41 = vpop.f32.mrf.mxu1 }
 0xb12   : > { %v2504_v51 = vsel %vm1087_vm3, %v2496_v40, 0  ;;  %v2425_v42 = vadd.f32 %v3392_v38, %v2424_v41 }
 0xb13   : > { %v3697_v43 = vpop.f32.mrf.mxu1  ;;  %3707 = vmatpush3.bf16.xpose.msra.mxu1 %v2504_v51 }
 0xb14   : > { %v2497_v44 = vpack.c.bf16 %v2425_v42, %v2425_v42  ;;  %3718 = vmatprep.subr.bf16.mxu1 %v3915_v3  ;;  %v3411_v43 = vld [vmem:[%s4549_s2] ss:$0 sm:$0xff] }
 0xb16   : > { %v2550_v8 = vsel %vm1087_vm3, %v2497_v44, 0 }
 0xb17   : > { %3713 = vmatpush3.bf16.xpose.msra.mxu0 %v2550_v8 }
 0xb18   : > { %3724 = vmatprep.subr.bf16.mxu0 %v3915_v3 }
 0xb1a   : > { %3709 = vmatmul.mubr.msk.bf16.vlgmr.msra.gmra.mxu1 %vm1087_vm3, %v2494_v55 }
 0xb1b   : > { %3720 = vmatprep.mubr.msk.bf16.mxu1 %vm3916_vm1, %v3915_v3  ;;  %3719 = vmatpush3.bf16.msra.mxu1 %v2624_v57 }
 0xb1c   : > { %3730 = vmatprep.subr.bf16.mxu1 %v3915_v3 }
 0xb1e   : > { %3715 = vmatmul.mubr.msk.bf16.vlgmr.msra.gmra.mxu0 %vm1087_vm3, %v2495_v46 }
 0xb1f   : > { %3726 = vmatprep.mubr.msk.bf16.mxu0 %vm3916_vm1, %v3915_v3  ;;  %3725 = vmatpush3.bf16.msra.mxu0 %v2670_v61 }
 0xb20   : > { %3736 = vmatprep.subr.bf16.mxu0 %v3915_v3 }
 0xbda   : > { %v2540_v62 = vpop.f32.mrf.mxu1 }
 0xbdb   : > { %v2592_v63 = vmul.f32 0.35355338, %v2540_v62 }
 0xbdc   : > { %v3710_v0 = vpop.f32.mrf.mxu1 }
 0xbdd   : > { %v2594_v1 = vadd.f32 %v4181_v52, %v2592_v63 }
 0xbde   : > { %v2543_v2 = vpop.f32.mrf.mxu1  ;;  %v2586_v4 = vpop.f32.mrf.mxu0 }
 0xbdf   : > { %v2593_v5 = vmul.f32 0.35355338, %v2586_v4  ;;  %v2596_v7 = vsel %vm1087_vm3, %v2594_v1, -inf  ;;  %v3815_v4 = vld [vmem:[%s4085_s1 + $0x8] sm:$0xff]  }
 0xbe0   : > { %2597 = vmax.xlane.f32.xlu0 %v2596_v7  ;;  %v3711_v10 = vpop.f32.mrf.mxu1  ;;  %v3716_v11 = vpop.f32.mrf.mxu0  ;;  %v3817_v7 = vld [vmem:[%s4095_s30 + $0x18] sm:$0xff]  }
 0xbe1   : > { %v2595_v12 = vadd.f32 %v4176_v47, %v2593_v5  ;;  %v3816_v5 = vld [vmem:[%s4085_s1] sm:$0xff]  }
 0xbe2   : > { %v2589_v13 = vpop.f32.mrf.mxu0 }
 0xbe3   : > { %v2599_v14 = vsel %vm1087_vm3, %v2595_v12, -inf }
 0xbe4   : > { %2600 = vmax.xlane.f32.xlu1 %v2599_v14  ;;  %v3717_v15 = vpop.f32.mrf.mxu0 }
 0xc69   : > { %v2598_v16 = vpop.xlane.xlu0 %2597 }
 0xc6a   : > { %v2602_v17 = vsub.f32 %v2594_v1, %v2598_v16 }
 0xc6c   : > { %v2604_v18 = vmul.f32 1.442695, %v2602_v17 }
 0xc6d   : > { %v2601_v19 = vpop.xlane.xlu1 %2600 }
 0xc6e   : > { %3845 = vpow2.f32 %v2604_v18  ;;  %v2603_v52 = vsub.f32 %v2595_v12, %v2601_v19  ;;  %v3412_v18 = vld [vmem:[%s859_s5] ss:$0 sm:$0xff] }
 0xc70   : > { %v2606_v20 = vmul.f32 1.442695, %v2603_v52 }
 0xc72   : > { %3847 = vpow2.f32 %v2606_v20 }
 0xc7b   : > { %v3846_v22 = vpop.eup %3845 }
 0xc7c   : > { %v2608_v24 = vsel %vm1087_vm3, %v3846_v22, 0.0 }
 0xc7d   : > { %2609 = vadd.xlane.f32.xlu0 %v2608_v24 }
 0xc7f   : > { %v3848_v26 = vpop.eup %3847 }
 0xc80   : > { %v2611_v47 = vsel %vm1087_vm3, %v3848_v26, 0.0 }
 0xc81   : > { %2612 = vadd.xlane.f32.xlu1 %v2611_v47 }
 0xd06   : > { %v2610_v27 = vpop.xlane.xlu0 %2609 }
 0xd07   : > { %3849 = vrcp.f32 %v2610_v27 }
 0xd0a   : > { %v2613_v28 = vpop.xlane.xlu1 %2612 }
 0xd0b   : > { %3851 = vrcp.f32 %v2613_v28  ;;  %v3818_v28 = vld [vmem:[%s4095_s30 + $0x10] sm:$0xff]  }
 0xd14   : > { %v3850_v29 = vpop.eup %3849 }
 0xd15   : > { %v2616_v30 = vmul.f32 %v3850_v29, %v3846_v22  ;;  %v3413_v22 = vld [vmem:[%s862_s8] ss:$0 sm:$0xff]  ;;  %v3819_v29 = vld [vmem:[%s4095_s30 + $0x8] sm:$0xff]   ;;  %s4550_s8 = scalar_lea.vmem %s4498_s11, %s4038_s19 }
 0xd17   : > { %v2618_v31 = vpack.c.bf16 %v2616_v30, %v2616_v30  ;;  %v3820_v30 = vld [vmem:[%s4095_s30] sm:$0xff]   ;;  %s4551_s30 = scalar_lea.vmem %s4500_s13, %s4038_s19  ;;  %s3863_s19 = scalar_lea.vmem %s3033_s3, 256 }
 0xd18   : > { %v3852_v32 = vpop.eup %3851  ;;  %p3864_p7 = scmp.ne.s32.totalorder %s3033_s3, %s3863_s19  ;;  %p3871_p11 = scmp.lt.s32.totalorder %s3863_s19, %s3863_s19 }
 0xd19   : > { %3721 = vmatmul.mubr.msk.bf16.vlgmr.msra.gmra.mxu1 %vm1087_vm3, %v2618_v31  ;;  %v2617_v34 = vmul.f32 %v3852_v32, %v3848_v26  ;;  %v3414_v31 = vld [vmem:[%s4550_s8] ss:$0 sm:$0xff] }
 0xd1a   : > { %3732 = vmatprep.mubr.msk.bf16.mxu1 %vm3916_vm1, %v3915_v3  ;;  %3731 = vmatpush3.bf16.msra.mxu1 %v2719_v9  ;;  %p3865_p8 = pnand %p3864_p7, %p4462_p6  ;;  %p3872_p12 = por %p3871_p11, %p3870_p10 }
 0xd1b   : > { %v2619_v35 = vpack.c.bf16 %v2617_v34, %v2617_v34  ;;  %3744 = vmatprep.subr.bf16.mxu1 %v3915_v3 }
 0xd1c   : > { %p3866_p9 = pneg %p3865_p8 }
 0xd1d   : > { %3727 = vmatmul.mubr.msk.bf16.vlgmr.msra.gmra.mxu0 %vm1087_vm3, %v2619_v35 }
 0xd1e   : > { %3740 = vmatprep.mubr.msk.bf16.mxu0 %vm3916_vm1, %v3915_v3  ;;  %3737 = vmatpush3.bf16.msra.mxu0 %v3815_v4  ;;  %p3873_p13 = pnand %p3872_p12, %p3866_p9 }
 0xd1f   : > { %3738 = vmatprep.subr.bf16.mxu0 %v3915_v3 }
 0xd22   : > { %3739 = vmatpush3.bf16.msra.mxu0 %v3816_v5 }
 0xdd9   : > { %v2660_v38 = vpop.f32.mrf.mxu1 }
 0xddb   : > { %v3722_v39 = vpop.f32.mrf.mxu1 }
 0xddd   : > { %v2663_v21 = vpop.f32.mrf.mxu1  ;;  %v2706_v23 = vpop.f32.mrf.mxu0 }
 0xdde   : > { %v2712_v25 = vpack.c.bf16 %v2706_v23, %v2660_v38 }
 0xddf   : > { %v3723_v40 = vpop.f32.mrf.mxu1  ;;  %v3728_v41 = vpop.f32.mrf.mxu0 }
 0xde0   : > { %3733 = vmatmul.mubr.msk.bf16.vlgmr.msra.gmra.mxu1 %vm1087_vm3, %v2712_v25 }
 0xde1   : > { %v2709_v51 = vpop.f32.mrf.mxu0  ;;  %3752 = vmatprep.mubr.msk.bf16.mxu1 %vm3916_vm1, %v3915_v3  ;;  %3745 = vmatpush3.bf16.msra.mxu1 %v3817_v7 }
 0xde2   : > { %3746 = vmatprep.subr.bf16.mxu1 %v3915_v3 }
 0xde3   : > { %v3729_v6 = vpop.f32.mrf.mxu0 }
 0xde5   : > { %3747 = vmatpush3.bf16.msra.mxu1 %v3818_v28 }
 0xde6   : > { %3748 = vmatprep.subr.bf16.mxu1 %v3915_v3 }
 0xde9   : > { %3749 = vmatpush3.bf16.msra.mxu1 %v3819_v29 }
 0xdea   : > { %3750 = vmatprep.subr.bf16.mxu1 %v3915_v3  ;;  %v3418_v3 = vld [vmem:[%s4551_s30] ss:$0 sm:$0xff] }
 0xded   : > { %3751 = vmatpush3.bf16.msra.mxu1 %v3820_v30 }
 0xea0   : > { %v2755_v42 = vpop.f32.mrf.mxu1 }
 0xea1   : > { %v2762_v44 = vadd.f32 %v2755_v42, %v4362_v33 }
 0xea2   : > { %v3734_v55 = vpop.f32.mrf.mxu1 }
 0xea3   : > { %v2771_v8 = vadd.f32 %v3411_v43, %v2762_v44 }
 0xea4   : > { %v2758_v45 = vpop.f32.mrf.mxu1 }
 0xea5   : > { %v2763_v46 = vadd.f32 %v2758_v45, %v4366_v37  ;;  %v2773_v49 = vadd.f32 %v3861_v48, %v2771_v8 }
 0xea6   : > { %v3735_v50 = vpop.f32.mrf.mxu1 }
 0xea7   : > { %v2772_v53 = vadd.f32 %v3411_v43, %v2763_v46  ;;  %v2777_v54 = vsel %vm908_vm2, %v2773_v49, 0.0 }
 0xea8   : > { %2778 = vadd.xlane.f32.xlu0 %v2777_v54 }
 0xea9   : > { %v2774_v57 = vadd.f32 %v3862_v56, %v2772_v53 }
 0xeab   : > { %v2780_v58 = vsel %vm908_vm2, %v2774_v57, 0.0 }
 0xeac   : > { %2781 = vadd.xlane.f32.xlu1 %v2780_v58 }
 0xf31   : > { %v2779_v33 = vpop.xlane.xlu0 %2778 }
 0xf32   : > { %v2784_v59 = vmul.f32 0.03125, %v2779_v33 }
 0xf34   : > { %v2786_v60 = vsub.f32 %v2773_v49, %v2784_v59 }
 0xf35   : > { %v2782_v61 = vpop.xlane.xlu1 %2781 }
 0xf36   : > { %v2785_v37 = vmul.f32 0.03125, %v2782_v61  ;;  %v2788_v62 = vmul.f32 %v2786_v60, %v2786_v60 }
 0xf38   : > { %v2787_v63 = vsub.f32 %v2774_v57, %v2785_v37  ;;  %v2790_v0 = vsel %vm908_vm2, %v2788_v62, 0.0 }
 0xf39   : > { %2791 = vadd.xlane.f32.xlu0 %v2790_v0  ;;  %v3424_v0 = vld [vmem:[%s865_s20] ss:$0 sm:$0xff] }
 0xf3a   : > { %v2789_v1 = vmul.f32 %v2787_v63, %v2787_v63 }
 0xf3c   : > { %v2793_v2 = vsel %vm908_vm2, %v2789_v1, 0.0 }
 0xf3d   : > { %2794 = vadd.xlane.f32.xlu1 %v2793_v2  ;;  %v3425_v2 = vld [vmem:[%s868_s24] ss:$0 sm:$0xff] }
 0xfc2   : > { %v2792_v10 = vpop.xlane.xlu0 %2791 }
 0xfc3   : > { %v2796_v11 = vmul.f32 0.03125, %v2792_v10 }
 0xfc5   : > { %v2798_v12 = vadd.f32 1e-05, %v2796_v11 }
 0xfc6   : > { %v2795_v13 = vpop.xlane.xlu1 %2794 }
 0xfc7   : > { %3853 = vrsqrt.f32 %v2798_v12  ;;  %v2797_v14 = vmul.f32 0.03125, %v2795_v13 }
 0xfc9   : > { %v2799_v15 = vadd.f32 1e-05, %v2797_v14 }
 0xfcb   : > { %3855 = vrsqrt.f32 %v2799_v15 }
 0xfd4   : > { %v3854_v16 = vpop.eup %3853 }
 0xfd5   : > { %v2802_v17 = vmul.f32 %v3854_v16, %v2786_v60 }
 0xfd7   : > { %v2810_v20 = vmul.f32 %v3412_v18, %v2802_v17 }
 0xfd8   : > { %v3856_v19 = vpop.eup %3855 }
 0xfd9   : > { %v2803_v52 = vmul.f32 %v3856_v19, %v2787_v63  ;;  %v2818_v26 = vadd.f32 %v3413_v22, %v2810_v20 }
 0xfdb   : > { %v2811_v24 = vmul.f32 %v3412_v18, %v2803_v52 }
 0xfdd   : > { %v2819_v47 = vadd.f32 %v3413_v22, %v2811_v24 }
 0xfdf   : > { %v2820_v27 = vpack.c.bf16 %v2819_v47, %v2818_v26 }
 0xfe1   : > { %3741 = vmatmul.mubr.msk.bf16.vlgmr.msra.gmra.mxu0 %vm908_vm2, %v2820_v27 }
0x10a1   : > { %v2881_v32 = vpop.f32.mrf.mxu0 }
0x10a2   : > { %v2882_v35 = vadd.f32 %v3414_v31, %v2881_v32 }
0x10a3   : > { %v3742_v34 = vpop.f32.mrf.mxu0 }
0x10a4   : > { %v2888_v39 = vmax.f32 %v2882_v35, 0.0 }
0x10a5   : > { %v2884_v36 = vpop.f32.mrf.mxu0 }
0x10a6   : > { %v2885_v9 = vadd.f32 %v3414_v31, %v2884_v36 }
0x10a7   : > { %v3743_v38 = vpop.f32.mrf.mxu0 }
0x10a8   : > { %v2889_v21 = vmax.f32 %v2885_v9, 0.0 }
0x10aa   : > { %v2890_v23 = vpack.c.bf16 %v2889_v21, %v2888_v39 }
0x10ac   : > { %3753 = vmatmul.mubr.msk.bf16.vlgmr.msra.gmra.mxu1 %vm2930_vm5, %v2890_v23 }
0x116c   : > { %v2968_v25 = vpop.f32.mrf.mxu1 }
0x116d   : > { %v2969_v40 = vadd.f32 %v3418_v3, %v2968_v25 }
0x116e   : > { %v3754_v41 = vpop.f32.mrf.mxu1 }
0x116f   : > { %v2975_v51 = vadd.f32 %v2969_v40, %v2818_v26 }
0x1170   : > { %v2971_v6 = vpop.f32.mrf.mxu1 }
0x1171   : > { %v2972_v42 = vadd.f32 %v3418_v3, %v2971_v6  ;;  %v2979_v43 = vsel %vm908_vm2, %v2975_v51, 0.0 }
0x1172   : > { %2980 = vadd.xlane.f32.xlu0 %v2979_v43  ;;  %v3755_v44 = vpop.f32.mrf.mxu1 }
0x1173   : > { %v2976_v55 = vadd.f32 %v2972_v42, %v2819_v47 }
0x1175   : > { %v2982_v8 = vsel %vm908_vm2, %v2976_v55, 0.0 }
0x1176   : > { %2983 = vadd.xlane.f32.xlu1 %v2982_v8 }
0x11fb   : > { %v2981_v45 = vpop.xlane.xlu0 %2980 }
0x11fc   : > { %v2985_v46 = vmul.f32 0.03125, %v2981_v45 }
0x11fe   : > { %v2987_v48 = vsub.f32 %v2975_v51, %v2985_v46 }
0x11ff   : > { %v2984_v49 = vpop.xlane.xlu1 %2983 }
0x1200   : > { %v2986_v50 = vmul.f32 0.03125, %v2984_v49  ;;  %v2989_v53 = vmul.f32 %v2987_v48, %v2987_v48 }
0x1202   : > { %v2988_v54 = vsub.f32 %v2976_v55, %v2986_v50  ;;  %v2991_v56 = vsel %vm908_vm2, %v2989_v53, 0.0 }
0x1203   : > { %2992 = vadd.xlane.f32.xlu0 %v2991_v56 }
0x1204   : > { %v2990_v57 = vmul.f32 %v2988_v54, %v2988_v54 }
0x1206   : > { %v2994_v58 = vsel %vm908_vm2, %v2990_v57, 0.0 }
0x1207   : > { %2995 = vadd.xlane.f32.xlu1 %v2994_v58 }
0x128c   : > { %v2993_v33 = vpop.xlane.xlu0 %2992 }
0x128d   : > { %v2997_v59 = vmul.f32 0.03125, %v2993_v33 }
0x128f   : > { %v2999_v60 = vadd.f32 1e-05, %v2997_v59 }
0x1290   : > { %v2996_v61 = vpop.xlane.xlu1 %2995 }
0x1291   : > { %3857 = vrsqrt.f32 %v2999_v60  ;;  %v2998_v37 = vmul.f32 0.03125, %v2996_v61 }
0x1293   : > { %v3000_v62 = vadd.f32 1e-05, %v2998_v37 }
0x1295   : > { %3859 = vrsqrt.f32 %v3000_v62 }
0x129e   : > { %v3858_v63 = vpop.eup %3857 }
0x129f   : > { %v3003_v1 = vmul.f32 %v3858_v63, %v2987_v48 }
0x12a1   : > { %v3011_v4 = vmul.f32 %v3424_v0, %v3003_v1 }
0x12a2   : > { %v3860_v5 = vpop.eup %3859 }
0x12a3   : > { %v3004_v7 = vmul.f32 %v3860_v5, %v2988_v54  ;;  %v3019_v10 = vadd.f32 %v3425_v2, %v3011_v4 }
0x12a5   : > { %v3012_v11 = vmul.f32 %v3424_v0, %v3004_v7  ;;  %3021 = vst.msk [vmem:[#allocation2] sm:$0xff] %vm908_vm2, %v3019_v10 }
0x12a7   : > { %v3020_v12 = vadd.f32 %v3425_v2, %v3012_v11 }
0x12a9   : > { %3022 = vst.msk [vmem:[#allocation2 + $0x8] sm:$0xff] %vm908_vm2, %v3020_v12 }
0x12aa   : > { %3876 = shalt.err (!%p3873_p13)
}
0x12ab   : > { %s3918_s20 = smov 128   ;;  %s3919_s24 = smov 8  }
0x12ac   : > { %s4555_s4 = sld [smem:[#allocation23_spill]] }
0x12b2   : > { %3757 = dma.vmem_to_hbm [thread:$0]  (%p4462_p6), %s3033_s3, 256, %s4555_s4, [#allocation3], %s3918_s20, %s3918_s20, %s3919_s24  }
0x12b3   : > { %3900 = dma.done.wait (%p4462_p6), [#allocation3], 256  }
0x12b4   : > { %3902 = vsyncadd (%p4462_p6), [#allocation3], 4294967040 }
0x12b5 PF: > { %s4556_s0 = sld [smem:[#allocation7_spill]] }
0x12b6   : > { %s4557_s27 = sld [smem:[#allocation6_spill]] }
0x12b7   : > { %s4558_s28 = sld [smem:[#allocation8_spill]] }
0x12bb   : > { %s29_s29 = sadd.s32 1, %s4556_s0  }
0x12bc   : > { %p26_p0 = scmp.ge.s32.totalorder %s29_s29, 4  }
0x12be   :  { %28 = sbr.rel (!%p26_p0) target bundleno = 15 (0xf), region = 196 }
0x12c3   :  { %3048 = vsyncpa [#allocation3], 1 }
0x12c4   :  { %3050 = vsyncpa [#allocation3 + $0x1], 1 }

</bundles_post_ra>
